<compile_context>
chip_gen: v7x
topology: tpu7x:2x2x1
jax: 0.10.0
libtpu: 0.0.40
codegen_flags: <defaults>
</compile_context>

<pallas_src>
import functools

import jax
import jax.numpy as jnp
from jax import lax
from jax.experimental import pallas as pl
from jax.experimental.pallas import tpu as pltpu


# ---------------------------------------------------------------------------
# Pass 1: accumulate norms + Gram scores over HW tiles, emit softmax probs.
# ---------------------------------------------------------------------------
def _rsa_scores_kernel(scale_ref, x_ref, wqk_ref, bqk_ref, p_ref,
                       ssq_ref, gram_ref, *, num_heads):
    """scale_ref: SMEM (num_heads,) f32
       x_ref    : VMEM (1, C, hwt) bf16
       wqk_ref  : VMEM (2C, C)     bf16
       bqk_ref  : VMEM (2C, 1)     f32
       p_ref    : VMEM (1, C, ch)  f32   (written on the last HW tile only)
       ssq_ref  : VMEM (2C, 1)     f32   scratch (sum of squares over HW)
       gram_ref : VMEM (C, ch)     f32   scratch (per-head q@k^T, heads stacked
                                          on the sublane axis)
    """
    t = pl.program_id(1)
    nt = pl.num_programs(1)
    C = p_ref.shape[1]
    ch = C // num_heads

    @pl.when(t == 0)
    def _():
        ssq_ref[...] = jnp.zeros_like(ssq_ref)
        gram_ref[...] = jnp.zeros_like(gram_ref)

    x = x_ref[0]                                              # (C, hwt) bf16
    # q,k for this tile in f32 (bf16 MXU operands, f32 accumulation).
    qk = jnp.dot(wqk_ref[...], x,
                 preferred_element_type=jnp.float32) + bqk_ref[...]   # (2C, hwt)

    # Sum of squares in f32 from the pre-cast values (normalization accuracy).
    ssq_ref[...] += jnp.sum(qk * qk, axis=-1, keepdims=True)          # (2C, 1)

    # Cast once; one XLU transpose of the K tile amortized over all heads.
    qb = qk[:C].astype(jnp.bfloat16)                                  # (C, hwt)
    kT = jnp.transpose(qk[C:].astype(jnp.bfloat16))                   # (hwt, C)

    # Unnormalized per-head Gram scores, accumulated across HW tiles.
    # NOTE: q/k are bf16 and unnormalized here; inv-norms are folded on the
    # tiny (ch, ch) scores below (slightly less precise than normalize-first,
    # absorbed by the test tolerance).
    for h in range(num_heads):
        gram_ref[h * ch:(h + 1) * ch, :] += jnp.dot(
            qb[h * ch:(h + 1) * ch, :], kT[:, h * ch:(h + 1) * ch],
            preferred_element_type=jnp.float32)

    @pl.when(t == nt - 1)
    def _():
        # 1/max(||.||, 1e-12) == rsqrt(max(ssq, 1e-24))   (EUP rsqrt)
        inv = lax.rsqrt(jnp.maximum(ssq_ref[...], 1e-24))             # (2C, 1)
        inv_q = inv[:C]                                               # (C, 1)
        inv_k = inv[C:].reshape(1, C)                                 # (1, C)
        gram = gram_ref[...]                                          # (C, ch)
        for h in range(num_heads):
            a = gram[h * ch:(h + 1) * ch, :]                          # (ch, ch)
            a = a * inv_q[h * ch:(h + 1) * ch]                        # fold 1/||q||
            a = a * inv_k[:, h * ch:(h + 1) * ch] * scale_ref[h]      # fold 1/||k||, scale
            a = a - jnp.max(a, axis=-1, keepdims=True)
            e = jnp.exp(a)
            p_ref[0, h * ch:(h + 1) * ch, :] = e * pl.reciprocal(
                jnp.sum(e, axis=-1, keepdims=True), approx=True)


# ---------------------------------------------------------------------------
# Pass 2: per HW tile: v conv, p@v, one fused output projection + residual.
# ---------------------------------------------------------------------------
def _rsa_out_kernel(p_ref, x_ref, wv_ref, bv_ref, wout_ref, bout_ref,
                    o_ref, stage_ref, *, num_heads):
    """p_ref    : VMEM (1, C, ch)   f32   attention probabilities (pass 1)
       x_ref    : VMEM (1, C, hwt)  bf16
       wv_ref   : VMEM (C, C)       bf16
       bv_ref   : VMEM (C, 1)       f32
       wout_ref : VMEM (C, C)       bf16
       bout_ref : VMEM (C, 1)       f32
       o_ref    : VMEM (1, C, hwt)  bf16
       stage_ref: VMEM (C, hwt)     bf16  scratch (per-head attn@v, stacked)
    """
    C = x_ref.shape[1]
    ch = C // num_heads

    x = x_ref[0]                                                      # (C, hwt) bf16
    v = jnp.dot(wv_ref[...], x,
                preferred_element_type=jnp.float32) + bv_ref[...]     # (C, hwt) f32
    vb = v.astype(jnp.bfloat16)
    p = p_ref[0].astype(jnp.bfloat16)                                 # (C, ch) bf16

    # Stage every head's output; no per-head lane slicing of W_out.
    for h in range(num_heads):
        stage_ref[h * ch:(h + 1) * ch, :] = jnp.dot(
            p[h * ch:(h + 1) * ch, :], vb[h * ch:(h + 1) * ch, :],
            preferred_element_type=jnp.float32).astype(jnp.bfloat16)

    # One K=C projection matmul + bias + residual.
    y = jnp.dot(wout_ref[...], stage_ref[...],
                preferred_element_type=jnp.float32)
    y = y + bout_ref[...] + x.astype(jnp.float32)
    o_ref[0] = y.astype(o_ref.dtype)


# ---------------------------------------------------------------------------
# Wrapper
# ---------------------------------------------------------------------------
def _vmem_limit(footprint_bytes):
    # 2x the estimated footprint + headroom, clamped below physical VMEM on
    # all current generations (v7x has 64 MiB total per TC).
    return int(min(max(2 * footprint_bytes + (8 << 20), 32 << 20), 96 << 20))


def rs_attention(x, scale, w_qkv, b_qkv, w_out, b_out, *, num_heads,
                 hw_tile=None):
    """x: (B, C, H, W) float32 (NCHW, like the PyTorch module). Returns bf16."""
    B, C, H, W = x.shape
    HW = H * W
    assert C % num_heads == 0, "dim must be divisible by num_heads"
    ch = C // num_heads
    assert ch % 16 == 0, "channels-per-head must be a multiple of 16 (bf16 tiles)"
    assert HW % 128 == 0, "H*W must be a multiple of 128"

    if hw_tile is None:
        hw_tile = HW
        for cand in (4096, 2048, 1024, 512, 256, 128):
            if HW % cand == 0:
                hw_tile = min(HW, cand)
                break
    assert hw_tile % 128 == 0 and HW % hw_tile == 0
    nt = HW // hw_tile

    # bf16 HBM I/O for activations; weights bf16; biases / scale f32.
    xb = x.reshape(B, C, HW).astype(jnp.bfloat16)
    w_qk = w_qkv[:2 * C].astype(jnp.bfloat16)
    w_v = w_qkv[2 * C:].astype(jnp.bfloat16)
    b_qk = b_qkv[:2 * C].reshape(2 * C, 1).astype(jnp.float32)
    b_v = b_qkv[2 * C:].reshape(C, 1).astype(jnp.float32)
    w_o = w_out.astype(jnp.bfloat16)
    b_o = b_out.reshape(C, 1).astype(jnp.float32)
    scale = scale.reshape(num_heads).astype(jnp.float32)

    # ----- pass 1: attention probabilities -------------------------------
    vmem1 = _vmem_limit(
        2 * (C * hw_tile * 2) +                      # x tile, double-buffered
        2 * (2 * C * C * 2 + 2 * C * 4) +            # w_qk / b_qk
        2 * (C * ch * 4) +                           # p output block
        2 * C * hw_tile * 4 + 3 * C * hw_tile * 2 +  # qk f32 + bf16 copies
        3 * C * 128 * 4)                             # padded scratch
    p = pl.pallas_call(
        functools.partial(_rsa_scores_kernel, num_heads=num_heads),
        out_shape=jax.ShapeDtypeStruct((B, C, ch), jnp.float32),
        grid_spec=pltpu.PrefetchScalarGridSpec(
            num_scalar_prefetch=1,                   # `scale` -> SMEM
            grid=(B, nt),
            in_specs=[
                pl.BlockSpec((1, C, hw_tile), lambda b, t, s: (b, 0, t)),  # x
                pl.BlockSpec((2 * C, C), lambda b, t, s: (0, 0)),          # w_qk
                pl.BlockSpec((2 * C, 1), lambda b, t, s: (0, 0)),          # b_qk
            ],
            out_specs=pl.BlockSpec((1, C, ch), lambda b, t, s: (b, 0, 0)),
            scratch_shapes=[pltpu.VMEM((2 * C, 1), jnp.float32),
                            pltpu.VMEM((C, ch), jnp.float32)],
        ),
        compiler_params=pltpu.CompilerParams(
            dimension_semantics=("parallel", "arbitrary"),
            vmem_limit_bytes=vmem1),
        cost_estimate=pl.CostEstimate(
            flops=int(2 * B * HW * C * (2 * C + ch)),
            transcendentals=int(B * C * ch),
            bytes_accessed=int(B * C * HW * 2 + 2 * C * C * 2 + 2 * C * 4
                               + B * C * ch * 4)),
    )(scale, xb, w_qk, b_qk)

    # ----- pass 2: v conv, attn@v, fused projection + residual -----------
    vmem2 = _vmem_limit(
        2 * (2 * C * hw_tile * 2) +                  # x + out tiles
        2 * (C * ch * 4) +                           # p block
        2 * (2 * C * C * 2 + 2 * C * 4) +            # w_v / w_out / biases
        2 * C * hw_tile * 4 +                        # v / y f32 intermediates
        C * hw_tile * 2)                             # stage scratch
    y = pl.pallas_call(
        functools.partial(_rsa_out_kernel, num_heads=num_heads),
        out_shape=jax.ShapeDtypeStruct((B, C, HW), jnp.bfloat16),
        grid_spec=pltpu.PrefetchScalarGridSpec(
            num_scalar_prefetch=0,
            grid=(B, nt),
            in_specs=[
                pl.BlockSpec((1, C, ch), lambda b, t: (b, 0, 0)),          # p
                pl.BlockSpec((1, C, hw_tile), lambda b, t: (b, 0, t)),     # x
                pl.BlockSpec((C, C), lambda b, t: (0, 0)),                 # w_v
                pl.BlockSpec((C, 1), lambda b, t: (0, 0)),                 # b_v
                pl.BlockSpec((C, C), lambda b, t: (0, 0)),                 # w_out
                pl.BlockSpec((C, 1), lambda b, t: (0, 0)),                 # b_out
            ],
            out_specs=pl.BlockSpec((1, C, hw_tile), lambda b, t: (b, 0, t)),
            scratch_shapes=[pltpu.VMEM((C, hw_tile), jnp.bfloat16)],
        ),
        compiler_params=pltpu.CompilerParams(
            dimension_semantics=("parallel", "parallel"),
            vmem_limit_bytes=vmem2),
        cost_estimate=pl.CostEstimate(
            flops=int(2 * B * HW * C * (2 * C + ch)),
            transcendentals=0,
            bytes_accessed=int(2 * B * C * HW * 2 + B * C * ch * 4
                               + 2 * C * C * 2 + 2 * C * 4)),
    )(p, xb, w_v, b_v, w_o, b_o)

    return y.reshape(B, C, H, W)


# ---------------------------------------------------------------------------
# Plain-JAX reference mirroring the PyTorch forward (f32).
# ---------------------------------------------------------------------------
def rs_attention_ref(x, scale, w_qkv, b_qkv, w_out, b_out, *, num_heads):
    B, C, H, W = x.shape
    HW = H * W
    xf = x.reshape(B, C, HW)
    qkv = jnp.einsum('oc,bcl->bol', w_qkv, xf) + b_qkv[None, :, None]
    q, k, v = jnp.split(qkv, 3, axis=1)
    heads = lambda t: t.reshape(B, num_heads, C // num_heads, HW)
    q, k, v = heads(q), heads(k), heads(v)
    qn = q / jnp.maximum(jnp.linalg.norm(q, axis=-1, keepdims=True), 1e-12)
    kn = k / jnp.maximum(jnp.linalg.norm(k, axis=-1, keepdims=True), 1e-12)
    attn = jnp.einsum('bhcl,bhdl->bhcd', qn, kn) * scale[None, :, None, None]
    attn = jax.nn.softmax(attn, axis=-1)
    out = jnp.einsum('bhcd,bhdl->bhcl', attn, v).reshape(B, C, HW)
    y = jnp.einsum('oc,bcl->bol', w_out, out) + b_out[None, :, None]
    return (y + xf).reshape(B, C, H, W)


if __name__ == "__main__":
    B, C, H, W = 2, 64, 16, 16
    num_heads = 4                      # ch = 16

    key = jax.random.PRNGKey(0)
    kx, kq, kbq, ko, kbo = jax.random.split(key, 5)

    x = jax.random.normal(kx, (B, C, H, W), dtype=jnp.float32)
    w_qkv = 0.1 * jax.random.normal(kq, (3 * C, C), dtype=jnp.float32)
    b_qkv = 0.1 * jax.random.normal(kbq, (3 * C,), dtype=jnp.float32)
    w_out = 0.1 * jax.random.normal(ko, (C, C), dtype=jnp.float32)
    b_out = 0.1 * jax.random.normal(kbo, (C,), dtype=jnp.float32)
    scale = 1.0 + 0.1 * jnp.arange(num_heads, dtype=jnp.float32)

    # hw_tile=128 -> two HW tiles per batch, exercising the cross-tile
    # norm / Gram accumulation path.
    y = rs_attention(x, scale, w_qkv, b_qkv, w_out, b_out,
                     num_heads=num_heads, hw_tile=128)
    y = jax.block_until_ready(y)

    y_ref = rs_attention_ref(x, scale, w_qkv, b_qkv, w_out, b_out,
                             num_heads=num_heads)
    assert y.shape == (B, C, H, W)
    # bf16 HBM I/O + bf16 MXU operands + approx softmax reciprocal vs a pure
    # f32 reference => a few 1e-2 absolute error worst case.
    err = float(jnp.max(jnp.abs(y.astype(jnp.float32) - y_ref)))
    assert err < 5e-2, err

    print("KERNEL_OK")
</pallas_src>

<mosaic_0001>
module attributes {stable_mosaic.version = 11 : i64} {
  func.func @_rsa_scores_kernel(%arg0: i32, %arg1: i32, %arg2: memref<4xf32, #tpu.memory_space<smem>>, %arg3: memref<1x64x128xbf16, #tpu.memory_space<vmem>>, %arg4: memref<128x64xbf16, #tpu.memory_space<vmem>>, %arg5: memref<128x1xf32, #tpu.memory_space<vmem>>, %arg6: memref<1x64x16xf32, #tpu.memory_space<vmem>>, %arg7: memref<128x1xf32, #tpu.memory_space<vmem>>, %arg8: memref<64x16xf32, #tpu.memory_space<vmem>>) attributes {dimension_semantics = [#tpu.dimension_semantics<parallel>, #tpu.dimension_semantics<arbitrary>], iteration_bounds = array<i64: 2, 2>, scalar_prefetch = 1 : i64, scratch_operands = 2 : i64, tpu.core_type = #tpu.core_type<tc>, window_params = [{transform_indices = @transform_0, window_bounds = array<i64: 1, 64, 128>}, {pipeline_mode = #tpu.pipeline_mode<synchronous>, transform_indices = @transform_1, window_bounds = array<i64: 128, 64>}, {pipeline_mode = #tpu.pipeline_mode<synchronous>, transform_indices = @transform_2, window_bounds = array<i64: 128, 1>}, {transform_indices = @transform_3, window_bounds = array<i64: 1, 64, 16>}]} {
    %c0_i32 = arith.constant 0 : i32
    %0 = arith.cmpi eq, %arg1, %c0_i32 : i32
    %1 = arith.extui %0 : i1 to i32
    %c0_i32_0 = arith.constant 0 : i32
    %2 = arith.cmpi ne, %1, %c0_i32_0 : i32
    scf.if %2 {
      %cst_30 = arith.constant 0.000000e+00 : f32
      %48 = vector.broadcast %cst_30 : f32 to vector<128x1xf32>
      %c0_31 = arith.constant 0 : index
      %c0_32 = arith.constant 0 : index
      %49 = vector.load %arg7[%c0_31, %c0_32] : memref<128x1xf32, #tpu.memory_space<vmem>>, vector<128x1xf32>
      tpu.vector_store %arg7[%c0_31, %c0_32], %48 {strides = array<i32>} : memref<128x1xf32, #tpu.memory_space<vmem>>, vector<128x1xf32>,
      %cst_33 = arith.constant 0.000000e+00 : f32
      %50 = vector.broadcast %cst_33 : f32 to vector<64x16xf32>
      %c0_34 = arith.constant 0 : index
      %c0_35 = arith.constant 0 : index
      %51 = vector.load %arg8[%c0_34, %c0_35] : memref<64x16xf32, #tpu.memory_space<vmem>>, vector<64x16xf32>
      tpu.vector_store %arg8[%c0_34, %c0_35], %50 {strides = array<i32>} : memref<64x16xf32, #tpu.memory_space<vmem>>, vector<64x16xf32>,
    } else {
    }
    %c0 = arith.constant 0 : index
    %c0_1 = arith.constant 0 : index
    %c0_2 = arith.constant 0 : index
    %3 = vector.load %arg3[%c0, %c0_1, %c0_2] : memref<1x64x128xbf16, #tpu.memory_space<vmem>>, vector<1x64x128xbf16>
    %4 = vector.shape_cast %3 : vector<1x64x128xbf16> to vector<64x128xbf16>
    %c0_3 = arith.constant 0 : index
    %c0_4 = arith.constant 0 : index
    %5 = vector.load %arg4[%c0_3, %c0_4] : memref<128x64xbf16, #tpu.memory_space<vmem>>, vector<128x64xbf16>
    %cst = arith.constant dense<0.000000e+00> : vector<128x128xf32>
    %6 = tpu.matmul %5, %4, %cst {dimension_numbers = #tpu.dot_dimension_numbers<[1], [0], [0], [1], [0, 0, 1, 1], [], []>} : vector<128x64xbf16>, vector<64x128xbf16>, vector<128x128xf32> -> vector<128x128xf32>
    %c0_5 = arith.constant 0 : index
    %c0_6 = arith.constant 0 : index
    %7 = vector.load %arg5[%c0_5, %c0_6] : memref<128x1xf32, #tpu.memory_space<vmem>>, vector<128x1xf32>
    %8 = vector.broadcast %7 : vector<128x1xf32> to vector<128x128xf32>
    %9 = arith.addf %6, %8 : vector<128x128xf32>
    %c0_7 = arith.constant 0 : index
    %c0_8 = arith.constant 0 : index
    %10 = vector.load %arg7[%c0_7, %c0_8] : memref<128x1xf32, #tpu.memory_space<vmem>>, vector<128x1xf32>
    %11 = arith.mulf %9, %9 : vector<128x128xf32>
    %cst_9 = arith.constant dense<0.000000e+00> : vector<128xf32>
    %12 = vector.multi_reduction <add>, %11, %cst_9 [1] : vector<128x128xf32> to vector<128xf32>
    %13 = vector.shape_cast %12 : vector<128xf32> to vector<128x1xf32>
    %14 = arith.addf %10, %13 : vector<128x1xf32>
    %c0_10 = arith.constant 0 : index
    %c0_11 = arith.constant 0 : index
    %15 = vector.load %arg7[%c0_10, %c0_11] : memref<128x1xf32, #tpu.memory_space<vmem>>, vector<128x1xf32>
    tpu.vector_store %arg7[%c0_10, %c0_11], %14 {strides = array<i32>} : memref<128x1xf32, #tpu.memory_space<vmem>>, vector<128x1xf32>,
    %16 = vector.extract_strided_slice %9 {offsets = [0, 0], sizes = [64, 128], strides = [1, 1]} : vector<128x128xf32> to vector<64x128xf32>
    %17 = arith.truncf %16 : vector<64x128xf32> to vector<64x128xbf16>
    %18 = vector.extract_strided_slice %9 {offsets = [64, 0], sizes = [64, 128], strides = [1, 1]} : vector<128x128xf32> to vector<64x128xf32>
    %19 = arith.truncf %18 : vector<64x128xf32> to vector<64x128xbf16>
    %20 = tpu.transpose %19, [1, 0] : vector<64x128xbf16> -> vector<128x64xbf16>
    %c0_12 = arith.constant 0 : index
    %c0_13 = arith.constant 0 : index
    %21 = vector.load %arg8[%c0_12, %c0_13] : memref<64x16xf32, #tpu.memory_space<vmem>>, vector<16x16xf32>
    %22 = vector.extract_strided_slice %17 {offsets = [0, 0], sizes = [16, 128], strides = [1, 1]} : vector<64x128xbf16> to vector<16x128xbf16>
    %23 = vector.extract_strided_slice %20 {offsets = [0, 0], sizes = [128, 16], strides = [1, 1]} : vector<128x64xbf16> to vector<128x16xbf16>
    %cst_14 = arith.constant dense<0.000000e+00> : vector<16x16xf32>
    %24 = tpu.matmul %22, %23, %cst_14 {dimension_numbers = #tpu.dot_dimension_numbers<[1], [0], [0], [1], [0, 0, 1, 1], [], []>} : vector<16x128xbf16>, vector<128x16xbf16>, vector<16x16xf32> -> vector<16x16xf32>
    %25 = arith.addf %21, %24 : vector<16x16xf32>
    %c0_15 = arith.constant 0 : index
    %c0_16 = arith.constant 0 : index
    %26 = vector.load %arg8[%c0_15, %c0_16] : memref<64x16xf32, #tpu.memory_space<vmem>>, vector<16x16xf32>
    tpu.vector_store %arg8[%c0_15, %c0_16], %25 {strides = array<i32>} : memref<64x16xf32, #tpu.memory_space<vmem>>, vector<16x16xf32>,
    %c16 = arith.constant 16 : index
    %c0_17 = arith.constant 0 : index
    %27 = vector.load %arg8[%c16, %c0_17] : memref<64x16xf32, #tpu.memory_space<vmem>>, vector<16x16xf32>
    %28 = vector.extract_strided_slice %17 {offsets = [16, 0], sizes = [16, 128], strides = [1, 1]} : vector<64x128xbf16> to vector<16x128xbf16>
    %29 = vector.extract_strided_slice %20 {offsets = [0, 16], sizes = [128, 16], strides = [1, 1]} : vector<128x64xbf16> to vector<128x16xbf16>
    %cst_18 = arith.constant dense<0.000000e+00> : vector<16x16xf32>
    %30 = tpu.matmul %28, %29, %cst_18 {dimension_numbers = #tpu.dot_dimension_numbers<[1], [0], [0], [1], [0, 0, 1, 1], [], []>} : vector<16x128xbf16>, vector<128x16xbf16>, vector<16x16xf32> -> vector<16x16xf32>
    %31 = arith.addf %27, %30 : vector<16x16xf32>
    %c16_19 = arith.constant 16 : index
    %c0_20 = arith.constant 0 : index
    %32 = vector.load %arg8[%c16_19, %c0_20] : memref<64x16xf32, #tpu.memory_space<vmem>>, vector<16x16xf32>
    tpu.vector_store %arg8[%c16_19, %c0_20], %31 {strides = array<i32>} : memref<64x16xf32, #tpu.memory_space<vmem>>, vector<16x16xf32>,
    %c32 = arith.constant 32 : index
    %c0_21 = arith.constant 0 : index
    %33 = vector.load %arg8[%c32, %c0_21] : memref<64x16xf32, #tpu.memory_space<vmem>>, vector<16x16xf32>
    %34 = vector.extract_strided_slice %17 {offsets = [32, 0], sizes = [16, 128], strides = [1, 1]} : vector<64x128xbf16> to vector<16x128xbf16>
    %35 = vector.extract_strided_slice %20 {offsets = [0, 32], sizes = [128, 16], strides = [1, 1]} : vector<128x64xbf16> to vector<128x16xbf16>
    %cst_22 = arith.constant dense<0.000000e+00> : vector<16x16xf32>
    %36 = tpu.matmul %34, %35, %cst_22 {dimension_numbers = #tpu.dot_dimension_numbers<[1], [0], [0], [1], [0, 0, 1, 1], [], []>} : vector<16x128xbf16>, vector<128x16xbf16>, vector<16x16xf32> -> vector<16x16xf32>
    %37 = arith.addf %33, %36 : vector<16x16xf32>
    %c32_23 = arith.constant 32 : index
    %c0_24 = arith.constant 0 : index
    %38 = vector.load %arg8[%c32_23, %c0_24] : memref<64x16xf32, #tpu.memory_space<vmem>>, vector<16x16xf32>
    tpu.vector_store %arg8[%c32_23, %c0_24], %37 {strides = array<i32>} : memref<64x16xf32, #tpu.memory_space<vmem>>, vector<16x16xf32>,
    %c48 = arith.constant 48 : index
    %c0_25 = arith.constant 0 : index
    %39 = vector.load %arg8[%c48, %c0_25] : memref<64x16xf32, #tpu.memory_space<vmem>>, vector<16x16xf32>
    %40 = vector.extract_strided_slice %17 {offsets = [48, 0], sizes = [16, 128], strides = [1, 1]} : vector<64x128xbf16> to vector<16x128xbf16>
    %41 = vector.extract_strided_slice %20 {offsets = [0, 48], sizes = [128, 16], strides = [1, 1]} : vector<128x64xbf16> to vector<128x16xbf16>
    %cst_26 = arith.constant dense<0.000000e+00> : vector<16x16xf32>
    %42 = tpu.matmul %40, %41, %cst_26 {dimension_numbers = #tpu.dot_dimension_numbers<[1], [0], [0], [1], [0, 0, 1, 1], [], []>} : vector<16x128xbf16>, vector<128x16xbf16>, vector<16x16xf32> -> vector<16x16xf32>
    %43 = arith.addf %39, %42 : vector<16x16xf32>
    %c48_27 = arith.constant 48 : index
    %c0_28 = arith.constant 0 : index
    %44 = vector.load %arg8[%c48_27, %c0_28] : memref<64x16xf32, #tpu.memory_space<vmem>>, vector<16x16xf32>
    tpu.vector_store %arg8[%c48_27, %c0_28], %43 {strides = array<i32>} : memref<64x16xf32, #tpu.memory_space<vmem>>, vector<16x16xf32>,
    %c1_i32 = arith.constant 1 : i32
    %45 = arith.cmpi eq, %arg1, %c1_i32 : i32
    %46 = arith.extui %45 : i1 to i32
    %c0_i32_29 = arith.constant 0 : i32
    %47 = arith.cmpi ne, %46, %c0_i32_29 : i32
    scf.if %47 {
      %c0_30 = arith.constant 0 : index
      %c0_31 = arith.constant 0 : index
      %48 = vector.load %arg7[%c0_30, %c0_31] : memref<128x1xf32, #tpu.memory_space<vmem>>, vector<128x1xf32>
      %cst_32 = arith.constant 1.000000e-24 : f32
      %49 = vector.broadcast %cst_32 : f32 to vector<128x1xf32>
      %50 = arith.maximumf %48, %49 : vector<128x1xf32>
      %51 = math.rsqrt %50 : vector<128x1xf32>
      %52 = vector.extract_strided_slice %51 {offsets = [0, 0], sizes = [64, 1], strides = [1, 1]} : vector<128x1xf32> to vector<64x1xf32>
      %53 = vector.extract_strided_slice %51 {offsets = [64, 0], sizes = [64, 1], strides = [1, 1]} : vector<128x1xf32> to vector<64x1xf32>
      %54 = vector.shape_cast %53 : vector<64x1xf32> to vector<1x64xf32>
      %c0_33 = arith.constant 0 : index
      %c0_34 = arith.constant 0 : index
      %55 = vector.load %arg8[%c0_33, %c0_34] : memref<64x16xf32, #tpu.memory_space<vmem>>, vector<64x16xf32>
      %56 = vector.extract_strided_slice %55 {offsets = [0, 0], sizes = [16, 16], strides = [1, 1]} : vector<64x16xf32> to vector<16x16xf32>
      %57 = vector.extract_strided_slice %52 {offsets = [0, 0], sizes = [16, 1], strides = [1, 1]} : vector<64x1xf32> to vector<16x1xf32>
      %58 = vector.broadcast %57 : vector<16x1xf32> to vector<16x16xf32>
      %59 = arith.mulf %56, %58 : vector<16x16xf32>
      %60 = vector.extract_strided_slice %54 {offsets = [0, 0], sizes = [1, 16], strides = [1, 1]} : vector<1x64xf32> to vector<1x16xf32>
      %61 = vector.broadcast %60 : vector<1x16xf32> to vector<16x16xf32>
      %62 = arith.mulf %59, %61 : vector<16x16xf32>
      %c0_35 = arith.constant 0 : index
      %63 = memref.load %arg2[%c0_35] : memref<4xf32, #tpu.memory_space<smem>>
      %64 = vector.broadcast %63 : f32 to vector<16x16xf32>
      %65 = arith.mulf %62, %64 : vector<16x16xf32>
      %cst_36 = arith.constant dense<0xFF800000> : vector<16xf32>
      %66 = vector.multi_reduction <maximumf>, %65, %cst_36 [1] : vector<16x16xf32> to vector<16xf32>
      %67 = vector.shape_cast %66 : vector<16xf32> to vector<16x1xf32>
      %68 = vector.broadcast %67 : vector<16x1xf32> to vector<16x16xf32>
      %69 = arith.subf %65, %68 : vector<16x16xf32>
      %70 = math.exp %69 : vector<16x16xf32>
      %cst_37 = arith.constant dense<0.000000e+00> : vector<16xf32>
      %71 = vector.multi_reduction <add>, %70, %cst_37 [1] : vector<16x16xf32> to vector<16xf32>
      %72 = vector.shape_cast %71 : vector<16xf32> to vector<16x1xf32>
      %73 = tpu.reciprocal %72 {approx = true} : vector<16x1xf32> -> vector<16x1xf32>
      %74 = vector.broadcast %73 : vector<16x1xf32> to vector<16x16xf32>
      %75 = arith.mulf %70, %74 : vector<16x16xf32>
      %c0_38 = arith.constant 0 : index
      %c0_39 = arith.constant 0 : index
      %c0_40 = arith.constant 0 : index
      %76 = vector.load %arg6[%c0_38, %c0_39, %c0_40] : memref<1x64x16xf32, #tpu.memory_space<vmem>>, vector<1x16x16xf32>
      %77 = vector.shape_cast %76 : vector<1x16x16xf32> to vector<16x16xf32>
      %78 = vector.shape_cast %75 : vector<16x16xf32> to vector<1x16x16xf32>
      tpu.vector_store %arg6[%c0_38, %c0_39, %c0_40], %78 {strides = array<i32>} : memref<1x64x16xf32, #tpu.memory_space<vmem>>, vector<1x16x16xf32>,
      %79 = vector.extract_strided_slice %55 {offsets = [16, 0], sizes = [16, 16], strides = [1, 1]} : vector<64x16xf32> to vector<16x16xf32>
      %80 = vector.extract_strided_slice %52 {offsets = [16, 0], sizes = [16, 1], strides = [1, 1]} : vector<64x1xf32> to vector<16x1xf32>
      %81 = vector.broadcast %80 : vector<16x1xf32> to vector<16x16xf32>
      %82 = arith.mulf %79, %81 : vector<16x16xf32>
      %83 = vector.extract_strided_slice %54 {offsets = [0, 16], sizes = [1, 16], strides = [1, 1]} : vector<1x64xf32> to vector<1x16xf32>
      %84 = vector.broadcast %83 : vector<1x16xf32> to vector<16x16xf32>
      %85 = arith.mulf %82, %84 : vector<16x16xf32>
      %c1 = arith.constant 1 : index
      %86 = memref.load %arg2[%c1] : memref<4xf32, #tpu.memory_space<smem>>
      %87 = vector.broadcast %86 : f32 to vector<16x16xf32>
      %88 = arith.mulf %85, %87 : vector<16x16xf32>
      %cst_41 = arith.constant dense<0xFF800000> : vector<16xf32>
      %89 = vector.multi_reduction <maximumf>, %88, %cst_41 [1] : vector<16x16xf32> to vector<16xf32>
      %90 = vector.shape_cast %89 : vector<16xf32> to vector<16x1xf32>
      %91 = vector.broadcast %90 : vector<16x1xf32> to vector<16x16xf32>
      %92 = arith.subf %88, %91 : vector<16x16xf32>
      %93 = math.exp %92 : vector<16x16xf32>
      %cst_42 = arith.constant dense<0.000000e+00> : vector<16xf32>
      %94 = vector.multi_reduction <add>, %93, %cst_42 [1] : vector<16x16xf32> to vector<16xf32>
      %95 = vector.shape_cast %94 : vector<16xf32> to vector<16x1xf32>
      %96 = tpu.reciprocal %95 {approx = true} : vector<16x1xf32> -> vector<16x1xf32>
      %97 = vector.broadcast %96 : vector<16x1xf32> to vector<16x16xf32>
      %98 = arith.mulf %93, %97 : vector<16x16xf32>
      %c0_43 = arith.constant 0 : index
      %c16_44 = arith.constant 16 : index
      %c0_45 = arith.constant 0 : index
      %99 = vector.load %arg6[%c0_43, %c16_44, %c0_45] : memref<1x64x16xf32, #tpu.memory_space<vmem>>, vector<1x16x16xf32>
      %100 = vector.shape_cast %99 : vector<1x16x16xf32> to vector<16x16xf32>
      %101 = vector.shape_cast %98 : vector<16x16xf32> to vector<1x16x16xf32>
      tpu.vector_store %arg6[%c0_43, %c16_44, %c0_45], %101 {strides = array<i32>} : memref<1x64x16xf32, #tpu.memory_space<vmem>>, vector<1x16x16xf32>,
      %102 = vector.extract_strided_slice %55 {offsets = [32, 0], sizes = [16, 16], strides = [1, 1]} : vector<64x16xf32> to vector<16x16xf32>
      %103 = vector.extract_strided_slice %52 {offsets = [32, 0], sizes = [16, 1], strides = [1, 1]} : vector<64x1xf32> to vector<16x1xf32>
      %104 = vector.broadcast %103 : vector<16x1xf32> to vector<16x16xf32>
      %105 = arith.mulf %102, %104 : vector<16x16xf32>
      %106 = vector.extract_strided_slice %54 {offsets = [0, 32], sizes = [1, 16], strides = [1, 1]} : vector<1x64xf32> to vector<1x16xf32>
      %107 = vector.broadcast %106 : vector<1x16xf32> to vector<16x16xf32>
      %108 = arith.mulf %105, %107 : vector<16x16xf32>
      %c2 = arith.constant 2 : index
      %109 = memref.load %arg2[%c2] : memref<4xf32, #tpu.memory_space<smem>>
      %110 = vector.broadcast %109 : f32 to vector<16x16xf32>
      %111 = arith.mulf %108, %110 : vector<16x16xf32>
      %cst_46 = arith.constant dense<0xFF800000> : vector<16xf32>
      %112 = vector.multi_reduction <maximumf>, %111, %cst_46 [1] : vector<16x16xf32> to vector<16xf32>
      %113 = vector.shape_cast %112 : vector<16xf32> to vector<16x1xf32>
      %114 = vector.broadcast %113 : vector<16x1xf32> to vector<16x16xf32>
      %115 = arith.subf %111, %114 : vector<16x16xf32>
      %116 = math.exp %115 : vector<16x16xf32>
      %cst_47 = arith.constant dense<0.000000e+00> : vector<16xf32>
      %117 = vector.multi_reduction <add>, %116, %cst_47 [1] : vector<16x16xf32> to vector<16xf32>
      %118 = vector.shape_cast %117 : vector<16xf32> to vector<16x1xf32>
      %119 = tpu.reciprocal %118 {approx = true} : vector<16x1xf32> -> vector<16x1xf32>
      %120 = vector.broadcast %119 : vector<16x1xf32> to vector<16x16xf32>
      %121 = arith.mulf %116, %120 : vector<16x16xf32>
      %c0_48 = arith.constant 0 : index
      %c32_49 = arith.constant 32 : index
      %c0_50 = arith.constant 0 : index
      %122 = vector.load %arg6[%c0_48, %c32_49, %c0_50] : memref<1x64x16xf32, #tpu.memory_space<vmem>>, vector<1x16x16xf32>
      %123 = vector.shape_cast %122 : vector<1x16x16xf32> to vector<16x16xf32>
      %124 = vector.shape_cast %121 : vector<16x16xf32> to vector<1x16x16xf32>
      tpu.vector_store %arg6[%c0_48, %c32_49, %c0_50], %124 {strides = array<i32>} : memref<1x64x16xf32, #tpu.memory_space<vmem>>, vector<1x16x16xf32>,
      %125 = vector.extract_strided_slice %55 {offsets = [48, 0], sizes = [16, 16], strides = [1, 1]} : vector<64x16xf32> to vector<16x16xf32>
      %126 = vector.extract_strided_slice %52 {offsets = [48, 0], sizes = [16, 1], strides = [1, 1]} : vector<64x1xf32> to vector<16x1xf32>
      %127 = vector.broadcast %126 : vector<16x1xf32> to vector<16x16xf32>
      %128 = arith.mulf %125, %127 : vector<16x16xf32>
      %129 = vector.extract_strided_slice %54 {offsets = [0, 48], sizes = [1, 16], strides = [1, 1]} : vector<1x64xf32> to vector<1x16xf32>
      %130 = vector.broadcast %129 : vector<1x16xf32> to vector<16x16xf32>
      %131 = arith.mulf %128, %130 : vector<16x16xf32>
      %c3 = arith.constant 3 : index
      %132 = memref.load %arg2[%c3] : memref<4xf32, #tpu.memory_space<smem>>
      %133 = vector.broadcast %132 : f32 to vector<16x16xf32>
      %134 = arith.mulf %131, %133 : vector<16x16xf32>
      %cst_51 = arith.constant dense<0xFF800000> : vector<16xf32>
      %135 = vector.multi_reduction <maximumf>, %134, %cst_51 [1] : vector<16x16xf32> to vector<16xf32>
      %136 = vector.shape_cast %135 : vector<16xf32> to vector<16x1xf32>
      %137 = vector.broadcast %136 : vector<16x1xf32> to vector<16x16xf32>
      %138 = arith.subf %134, %137 : vector<16x16xf32>
      %139 = math.exp %138 : vector<16x16xf32>
      %cst_52 = arith.constant dense<0.000000e+00> : vector<16xf32>
      %140 = vector.multi_reduction <add>, %139, %cst_52 [1] : vector<16x16xf32> to vector<16xf32>
      %141 = vector.shape_cast %140 : vector<16xf32> to vector<16x1xf32>
      %142 = tpu.reciprocal %141 {approx = true} : vector<16x1xf32> -> vector<16x1xf32>
      %143 = vector.broadcast %142 : vector<16x1xf32> to vector<16x16xf32>
      %144 = arith.mulf %139, %143 : vector<16x16xf32>
      %c0_53 = arith.constant 0 : index
      %c48_54 = arith.constant 48 : index
      %c0_55 = arith.constant 0 : index
      %145 = vector.load %arg6[%c0_53, %c48_54, %c0_55] : memref<1x64x16xf32, #tpu.memory_space<vmem>>, vector<1x16x16xf32>
      %146 = vector.shape_cast %145 : vector<1x16x16xf32> to vector<16x16xf32>
      %147 = vector.shape_cast %144 : vector<16x16xf32> to vector<1x16x16xf32>
      tpu.vector_store %arg6[%c0_53, %c48_54, %c0_55], %147 {strides = array<i32>} : memref<1x64x16xf32, #tpu.memory_space<vmem>>, vector<1x16x16xf32>,
    } else {
    }
    return
  }
  func.func @transform_0(%arg0: i32, %arg1: i32, %arg2: memref<4xf32, #tpu.memory_space<smem>>) -> (i32, i32, i32) {
    %c0_i32 = arith.constant 0 : i32
    %c0_i32_0 = arith.constant 0 : i32
    return %arg0, %c0_i32, %arg1 : i32, i32, i32
  }
  func.func @transform_1(%arg0: i32, %arg1: i32, %arg2: memref<4xf32, #tpu.memory_space<smem>>) -> (i32, i32) {
    %c0_i32 = arith.constant 0 : i32
    %c0_i32_0 = arith.constant 0 : i32
    %c0_i32_1 = arith.constant 0 : i32
    return %c0_i32, %c0_i32_0 : i32, i32
  }
  func.func @transform_2(%arg0: i32, %arg1: i32, %arg2: memref<4xf32, #tpu.memory_space<smem>>) -> (i32, i32) {
    %c0_i32 = arith.constant 0 : i32
    %c0_i32_0 = arith.constant 0 : i32
    %c0_i32_1 = arith.constant 0 : i32
    return %c0_i32, %c0_i32_0 : i32, i32
  }
  func.func @transform_3(%arg0: i32, %arg1: i32, %arg2: memref<4xf32, #tpu.memory_space<smem>>) -> (i32, i32, i32) {
    %c0_i32 = arith.constant 0 : i32
    %c0_i32_0 = arith.constant 0 : i32
    %c0_i32_1 = arith.constant 0 : i32
    return %arg0, %c0_i32, %c0_i32_0 : i32, i32, i32
  }
}

</mosaic_0001>

<bundles_post_ra>
// kernel: tpu_custom_call.1
= control target key start
LH: loop header
LB: loop body
LE: loop exit
PB: predicated region body
PF: predicated region fallthrough
CT: control target
= control target key end

     0   :  { %s1996_s0 = inlined_call_operand.vmem [shape: f32[4], index: 0, kind: input, shape index: {}]   ;;  %s1997_s1 = inlined_call_operand.vmem [shape: bf16[2,64,256], index: 1, kind: input, shape index: {}]   ;;  %s1998_s2 = inlined_call_operand.vmem [shape: bf16[128,64], index: 2, kind: input, shape index: {}]   ;;  %s1999_s3 = inlined_call_operand.vmem [shape: f32[128,1], index: 3, kind: input, shape index: {}]   ;;  %s2000_s4 = inlined_call_operand.vmem [shape: f32[2,64,16], index: 4, kind: output, shape index: {}]  }
   0x1   :  { %s9_s17 = sshll.u32 %s1996_s0, 4  ;;  %s10_s17 = int_to_ptr.vmem [resolvable:$true] %s9_s17 }
   0x2   :  { %s1551_s18 = scalar_lea.vmem %s10_s17, 16  ;;  %p1556_p1 = scmp.lt.s32.totalorder %s10_s17, %s10_s17 }
   0x3   :  { %p1552_p0 = scmp.ne.s32.totalorder %s10_s17, %s1551_s18  ;;  %p1557_p2 = scmp.lt.s32.totalorder %s1551_s18, %s1551_s18 }
   0x5   :  { %p1558_p3 = por %p1557_p2, %p1556_p1 }
   0x7   :  { %p1559_p4 = pnand %p1558_p3, %p1552_p0 }
   0x9   :  { %1562 = shalt.err (!%p1559_p4)  }
   0xa   :  { %s1621_s19 = smov [#allocation5]  }
   0xb   :  { %12 = dma.vmem_to_smem %s10_s17, 16, %s1621_s19, [#allocation4] }
   0xc   :  { %1591 = dma.done.wait [#allocation4], 16 }
   0xd   :  { %1592 = vsyncadd [#allocation4], 4294967280 }
   0xe   :  { %14 = sfence }
   0xf   :  { %s1655_s20 = smov 0   ;;  %s1657_s21 = smov 0  }
  0x10   :  { %s1659_s22 = smov 0   ;;  %s1661_s0 = smov 0  }
  0x11   :  { %s1663_s23 = smov 0   ;;  %s1665_s24 = smov 0  }
  0x12   :  { %s1667_s25 = smov 0  }
  0x13 LB: > { %s29_s26 = sadd.s32 1, %s1611_s23  ;;  %s32_s27 = sadd.s32 1, %s1615_s24  ;;  %s1619_s25 = sphi %s1667_s25, %s20_s25   ;;  %s1615_s24 = sphi %s1665_s24, %s2006_s24   ;;  %s1611_s23 = sphi %s1663_s23, %s2005_s23   ;;  %s1607_s0 = sphi %s1661_s0, %s2004_s0   ;;  %s1603_s22 = sphi %s1659_s22, %s2003_s22   ;;  %s1599_s21 = sphi %s1657_s21, %s2002_s21   ;;  %s1595_s20 = sphi %s1655_s20, %s2001_s20  }
  0x14   : > { %p30_p5 = scmp.ge.s32.totalorder %s29_s26, 2  ;;  %p48_p6 = scmp.ne.s32.totalorder %s1599_s21, %s1595_s20 }
  0x15   : > { %p49_p7 = scmp.eq.s32.totalorder %s1619_s25, 0  ;;  %s41_s5 = sadd.s32 1, %s1599_s21 }
  0x16   : > { %s2008_s26 = smov (%p30_p5, %s29_s26), 0  ;;  %s2010_s27 = smov (!%p30_p5, %s32_s27), %s1615_s24 }
  0x17   : > { %p50_p8 = por %p49_p7, %p48_p6  ;;  %p34_p9 = scmp.ge.s32.totalorder %s2010_s27, 2 }
  0x18   : > { %s37_s28 = ssub.s32 %s1611_s23, %s2008_s26  ;;  %p1305_p11 = scmp.ge.s32.totalorder %s1619_s25, 4 }
  0x19   : > { %s2012_s27 = smov (%p34_p9, %s2010_s27), 0 }
  0x1a   : > { %s36_s29 = ssub.s32 %s1615_s24, %s2012_s27  ;;  %148 = sbr.rel (%p1305_p11) target bundleno = 44 (0x2c), region = 24 }
  0x1b   : > { %s38_s30 = sor.u32 %s37_s28, %s36_s29 }
  0x1c   : > { %p39_p10 = scmp.eq.s32.totalorder %s38_s30, 0 }
  0x1e   : > { %s1706_s6 = scalar_select %p39_p10, %s1599_s21, %s41_s5  }
  0x21   : > { %151 = sbr.rel (!%p50_p8) target bundleno = 44 (0x2c), region = 28  ;;  %s153_s7 = sand.u32 (%p50_p8), 1, %s1599_s21  }
  0x22   : > { %s1307_s8 = sshll.u32 (%p50_p8), %s1615_s24, 4  ;;  %s1306_s9 = sshll.u32 (%p50_p8), %s153_s7, 5 }
  0x23   : > { %s157_s10 = sadd.s32 (%p50_p8), %s1611_s23, %s1307_s8  ;;  %s155_s15 = scalar_lea.vmem (%p50_p8), [#allocation6], %s1306_s9 }
  0x24   : > { %s1308_s11 = sshll.u32 (%p50_p8), %s157_s10, 2 }
  0x25   : > { %s159_s14 = scalar_lea.vmem (%p50_p8), %s1997_s1, %s1308_s11 }
  0x26   : > { %v175_v0 = vld [vmem:[%s159_s14] sm:$0xf] (%p50_p8)  ;;  %v177_v1 = vld [vmem:[%s159_s14 + $0x8] sm:$0xf] (%p50_p8)  ;;  %v179_v2 = vld [vmem:[%s159_s14 + $0x10] sm:$0xf] (%p50_p8) }
  0x27   : > { %176 = vst [vmem:[%s155_s15] sm:$0xf] (%p50_p8), %v175_v0  ;;  %178 = vst [vmem:[%s155_s15 + $0x4] sm:$0xf] (%p50_p8), %v177_v1  ;;  %v181_v3 = vld [vmem:[%s159_s14 + $0x18] sm:$0xf] (%p50_p8) }
  0x28   : > { %180 = vst [vmem:[%s155_s15 + $0x8] sm:$0xf] %v179_v2  ;;  %v183_v4 = vld [vmem:[%s159_s14 + $0x20] sm:$0xf]  ;;  %v185_v5 = vld [vmem:[%s159_s14 + $0x28] sm:$0xf] }
  0x29   : > { %182 = vst [vmem:[%s155_s15 + $0xc] sm:$0xf] %v181_v3  ;;  %184 = vst [vmem:[%s155_s15 + $0x10] sm:$0xf] %v183_v4  ;;  %v187_v6 = vld [vmem:[%s159_s14 + $0x30] sm:$0xf] }
  0x2a   : > { %186 = vst [vmem:[%s155_s15 + $0x14] sm:$0xf] %v185_v5  ;;  %v189_v7 = vld [vmem:[%s159_s14 + $0x38] sm:$0xf]  ;;  %188 = vst [vmem:[%s155_s15 + $0x18] sm:$0xf] %v187_v6 }
  0x2b   : > { %190 = vst [vmem:[%s155_s15 + $0x1c] sm:$0xf] %v189_v7 }
  0x2c PF: > { %p1309_p12 = scmp.ge.s32.totalorder %s1619_s25, 1  ;;  %p228_p13 = scmp.lt.s32.totalorder %s1619_s25, 5 }
  0x2e   : > { %p229_p0 = pnand %p1309_p12, %p228_p13 }
  0x2f   : > { %s235_s16 = sand.u32 (!%p229_p0), 1, %s1595_s20   ;;  %p258_p1 = scmp.lt.s32.totalorder (!%p229_p0), %s1607_s0, 1 }
  0x30   : > { %232 = sbr.rel (%p229_p0) target bundleno = 1017 (0x3f9), region = 69  ;;  %s1310_s17 = sshll.u32 (!%p229_p0), %s235_s16, 5 }
  0x31   : > { %s1725_s30 = scalar_lea.vmem (!%p229_p0), [#allocation6], %s1310_s17  ;;  %p1313_p2 = scmp.ne.s32.totalorder (!%p229_p0), %s1603_s22, 0 }
  0x37   : > { %s2014_s0 = smov (!%p258_p1, %s1607_s0), 1  ;;  %267 = sbr.rel (%p1313_p2) target bundleno = 69 (0x45), region = 77 }
  0x38   : > { %s1340_s18 = sshll.u32 %s2014_s0, 6  ;;  %vm268_vm0 = vcmask (!%p1313_p2), 7168   ;;  %vm285_vm1 = vcmask (!%p1313_p2), 130048   ;;  %v1622_v8 = vmov (!%p1313_p2), 0.0  }
  0x39   : > { %s1723_s29 = scalar_lea.vmem %s2000_s4, %s1340_s18  ;;  %269 = vst.msk [vmem:[#allocation2] sm:$0xff] (!%p1313_p2), %vm268_vm0, %v1622_v8  ;;  %270 = vst.msk [vmem:[#allocation2 + $0x8] sm:$0xff] (!%p1313_p2), %vm268_vm0, %v1622_v8 }
  0x3a   : > { %271 = vst.msk [vmem:[#allocation2 + $0x10] sm:$0xff] (!%p1313_p2), %vm268_vm0, %v1622_v8  ;;  %272 = vst.msk [vmem:[#allocation2 + $0x18] sm:$0xff] (!%p1313_p2), %vm268_vm0, %v1622_v8 }
  0x3b   : > { %273 = vst.msk [vmem:[#allocation2 + $0x20] sm:$0xff] (!%p1313_p2), %vm268_vm0, %v1622_v8  ;;  %274 = vst.msk [vmem:[#allocation2 + $0x28] sm:$0xff] (!%p1313_p2), %vm268_vm0, %v1622_v8 }
  0x3c   : > { %275 = vst.msk [vmem:[#allocation2 + $0x30] sm:$0xff] (!%p1313_p2), %vm268_vm0, %v1622_v8  ;;  %276 = vst.msk [vmem:[#allocation2 + $0x38] sm:$0xff] (!%p1313_p2), %vm268_vm0, %v1622_v8 }
  0x3d   : > { %277 = vst.msk [vmem:[#allocation2 + $0x40] sm:$0xff] (!%p1313_p2), %vm268_vm0, %v1622_v8  ;;  %278 = vst.msk [vmem:[#allocation2 + $0x48] sm:$0xff] (!%p1313_p2), %vm268_vm0, %v1622_v8 }
  0x3e   : > { %279 = vst.msk [vmem:[#allocation2 + $0x50] sm:$0xff] %vm268_vm0, %v1622_v8  ;;  %280 = vst.msk [vmem:[#allocation2 + $0x58] sm:$0xff] %vm268_vm0, %v1622_v8 }
  0x3f   : > { %281 = vst.msk [vmem:[#allocation2 + $0x60] sm:$0xff] %vm268_vm0, %v1622_v8  ;;  %282 = vst.msk [vmem:[#allocation2 + $0x68] sm:$0xff] %vm268_vm0, %v1622_v8 }
  0x40   : > { %283 = vst.msk [vmem:[#allocation2 + $0x70] sm:$0xff] %vm268_vm0, %v1622_v8  ;;  %284 = vst.msk [vmem:[#allocation2 + $0x78] sm:$0xff] %vm268_vm0, %v1622_v8 }
  0x41   : > { %286 = vst.msk [vmem:[#allocation3] sm:$0xff] %vm285_vm1, %v1622_v8  ;;  %287 = vst.msk [vmem:[#allocation3 + $0x8] sm:$0xff] %vm285_vm1, %v1622_v8 }
  0x42   : > { %288 = vst.msk [vmem:[#allocation3 + $0x10] sm:$0xff] %vm285_vm1, %v1622_v8  ;;  %289 = vst.msk [vmem:[#allocation3 + $0x18] sm:$0xff] %vm285_vm1, %v1622_v8 }
  0x43   : > { %290 = vst.msk [vmem:[#allocation3 + $0x20] sm:$0xff] %vm285_vm1, %v1622_v8  ;;  %291 = vst.msk [vmem:[#allocation3 + $0x28] sm:$0xff] %vm285_vm1, %v1622_v8 }
  0x44   : > { %292 = vst.msk [vmem:[#allocation3 + $0x30] sm:$0xff] %vm285_vm1, %v1622_v8  ;;  %293 = vst.msk [vmem:[#allocation3 + $0x38] sm:$0xff] %vm285_vm1, %v1622_v8 }
  0x45 PF: > { %v1473_v9 = vld [vmem:[%s1725_s30] sm:$0xff]   ;;  %v1474_v10 = vld [vmem:[%s1725_s30 + $0x8] sm:$0xff]   ;;  %v1623_v11 = vmov 0   ;;  %v1475_v12 = vld [vmem:[%s1725_s30 + $0x10] sm:$0xff]   ;;  %vm478_vm2 = vcmask 523264   ;;  %v1624_v38 = vmov 0.0  }
  0x46   : > { %1361 = vmatprep.subr.bf16.mxu0 %v1473_v9  ;;  %1471 = vset.pattern.permute.xlu0 %v1623_v11  ;;  %v1477_v13 = vld [vmem:[%s1998_s2] sm:$0xff]   ;;  %v1476_v14 = vld [vmem:[%s1725_s30 + $0x18] sm:$0xff]   ;;  %v1478_v17 = vld [vmem:[%s1998_s2 + $0x8] sm:$0xff]   ;;  %vm1625_vm3 = vmmov 0   ;;  %vm680_vm4 = vcmask 7168   ;;  %vm750_vm5 = vcmask 130048  }
  0x47   : > { %1362 = vmatpush3.bf16.msra.mxu0 %v1473_v9  ;;  %1472 = vset.pattern.permute.xlu1 %v1623_v11  ;;  %v326_v15 = vld [vmem:[%s1999_s3 + $0x40] sm:$0xff]  ;;  %v327_v18 = vld [vmem:[%s1999_s3 + $0x48] sm:$0xff]  ;;  %v1479_v20 = vld [vmem:[%s1998_s2 + $0x10] sm:$0xff]   ;;  %p1334_p3 = scmp.ne.s32.totalorder %s1603_s22, 1 }
  0x48   : > { %1363 = vmatprep.subr.bf16.mxu0 %v1474_v10  ;;  %1369 = vmatprep.mubr.msk.bf16.mxu0 %vm478_vm2, %v1477_v13  ;;  %v318_v16 = vld [vmem:[%s1999_s3] sm:$0xff]  ;;  %v319_v19 = vld [vmem:[%s1999_s3 + $0x8] sm:$0xff]  ;;  %v328_v21 = vld [vmem:[%s1999_s3 + $0x50] sm:$0xff]  ;;  %s1912_s22 = sld [smem:[#allocation5]] (!%p1334_p3)  ;;  %s1921_s16 = sld [smem:[#allocation5 + $0x1]] (!%p1334_p3)  ;;  %vm985_vm6 = vcmask (!%p1334_p3), 130112  }
  0x49   : > { %376 = vperm.xlu0 %1471, %v326_v15   ;;  %336 = vperm.xlu1 %1472, %v318_v16   ;;  %v329_v22 = vld [vmem:[%s1999_s3 + $0x58] sm:$0xff]  ;;  %v320_v24 = vld [vmem:[%s1999_s3 + $0x10] sm:$0xff]  ;;  %v1481_v26 = vld [vmem:[%s1998_s2 + $0x20] sm:$0xff]   ;;  %s1928_s17 = sld [smem:[#allocation5 + $0x2]] (!%p1334_p3)  ;;  %s1935_s18 = sld [smem:[#allocation5 + $0x3]] (!%p1334_p3) }
  0x4a   : > { %v1480_v23 = vld [vmem:[%s1998_s2 + $0x18] sm:$0xff]   ;;  %v330_v27 = vld [vmem:[%s1999_s3 + $0x60] sm:$0xff]  ;;  %v331_v28 = vld [vmem:[%s1999_s3 + $0x68] sm:$0xff]  ;;  %1385 = vmatprep.subr.bf16.mxu1 %v1624_v38  ;;  %1387 = vmatprep.mubr.msk.bf16.mxu1 %vm1625_vm3, %v1624_v38 }
  0x4b   : > { %1364 = vmatpush3.bf16.msra.mxu0 %v1474_v10  ;;  %v321_v25 = vld [vmem:[%s1999_s3 + $0x18] sm:$0xff]  ;;  %v1482_v29 = vld [vmem:[%s1998_s2 + $0x28] sm:$0xff]   ;;  %v322_v30 = vld [vmem:[%s1999_s3 + $0x20] sm:$0xff] }
  0x4c   : > { %1365 = vmatprep.subr.bf16.mxu0 %v1475_v12  ;;  %v323_v31 = vld [vmem:[%s1999_s3 + $0x28] sm:$0xff]  ;;  %v1483_v32 = vld [vmem:[%s1998_s2 + $0x30] sm:$0xff]   ;;  %v333_v34 = vld [vmem:[%s1999_s3 + $0x78] sm:$0xff] }
  0x4d   : > { %381 = vperm.xlu0 %1471, %v327_v18   ;;  %341 = vperm.xlu1 %1472, %v319_v19   ;;  %v332_v33 = vld [vmem:[%s1999_s3 + $0x70] sm:$0xff]  ;;  %v1484_v35 = vld [vmem:[%s1998_s2 + $0x38] sm:$0xff]  }
  0x4e   : > { %v324_v36 = vld [vmem:[%s1999_s3 + $0x30] sm:$0xff]  ;;  %v325_v37 = vld [vmem:[%s1999_s3 + $0x38] sm:$0xff] }
  0x4f   : > { %1366 = vmatpush3.bf16.msra.mxu0 %v1475_v12 }
  0x50   : > { %1367 = vmatprep.subr.bf16.mxu0 %v1476_v14 }
  0x51   : > { %386 = vperm.xlu0 %1471, %v328_v21   ;;  %391 = vperm.xlu1 %1472, %v329_v22  }
  0x53   : > { %1368 = vmatpush3.bf16.msra.mxu0 %v1476_v14 }
  0x55   : > { %346 = vperm.xlu0 %1471, %v320_v24   ;;  %351 = vperm.xlu1 %1472, %v321_v25  }
  0x56   : > { %1370 = vmatmul.mubr.msk.bf16.vlgmr.msra.gmra.mrb[0].mxu0 %vm478_vm2, %v1478_v17 }
  0x57   : > { %1373 = vmatprep.mubr.msk.bf16.mxu0 %vm478_vm2, %v1479_v20 }
  0x59   : > { %396 = vperm.xlu0 %1471, %v330_v27   ;;  %401 = vperm.xlu1 %1472, %v331_v28  }
  0x5d   : > { %356 = vperm.xlu0 %1471, %v322_v30   ;;  %361 = vperm.xlu1 %1472, %v323_v31  }
  0x5e   : > { %1374 = vmatmul.mubr.msk.bf16.gmra.mrb[4].mxu0 %vm478_vm2, %v1480_v23 }
  0x5f   : > { %1377 = vmatprep.mubr.msk.bf16.mxu0 %vm478_vm2, %v1481_v26 }
  0x61   : > { %406 = vperm.xlu0 %1471, %v332_v33   ;;  %411 = vperm.xlu1 %1472, %v333_v34  }
  0x65   : > { %366 = vperm.xlu0 %1471, %v324_v36   ;;  %371 = vperm.xlu1 %1472, %v325_v37  }
  0x66   : > { %1378 = vmatmul.mubr.msk.bf16.gmra.mrb[8].mxu0 %vm478_vm2, %v1482_v29 }
  0x67   : > { %1381 = vmatprep.mubr.msk.bf16.mxu0 %vm478_vm2, %v1483_v32 }
  0x6e   : > { %1382 = vmatmul.mubr.msk.bf16.gmra.mrb[12].mxu0 %vm478_vm2, %v1484_v35 }
  0xc8   : > { %v377_v39 = vpop.permute.xlu0 %376  ;;  %v337_v40 = vpop.permute.xlu1 %336 }
  0xcc   : > { %v382_v41 = vpop.permute.xlu0 %381  ;;  %v342_v42 = vpop.permute.xlu1 %341 }
  0xd0   : > { %v387_v43 = vpop.permute.xlu0 %386  ;;  %v392_v44 = vpop.permute.xlu1 %391 }
  0xd4   : > { %v347_v45 = vpop.permute.xlu0 %346  ;;  %v352_v46 = vpop.permute.xlu1 %351 }
  0xd8   : > { %v1839_v47 = vpop.permute.xlu0 %396  ;;  %v1841_v48 = vpop.permute.xlu1 %401 }
  0xdc   : > { %v357_v49 = vpop.permute.xlu0 %356  ;;  %v362_v50 = vpop.permute.xlu1 %361 }
  0xe0   : > { %v407_v52 = vpop.permute.xlu0 %406  ;;  %v412_v56 = vpop.permute.xlu1 %411 }
  0xe4   : > { %v367_v0 = vpop.permute.xlu0 %366  ;;  %v372_v4 = vpop.permute.xlu1 %371 }
 0x129   : > { %v1371_v51 = vpop.f32.mrb[0].mxu0 }
 0x12a   : > { %v1843_v53 = vadd.f32 %v1371_v51, %v347_v45  ;;  %v537_v54 = vpop.f32.mrb[1].mxu0  ;;  %v601_v51 = vld [vmem:[#allocation2 + $0x8] sm:$0xff] }
 0x12b   : > { %v1372_v55 = vpop.f32.mrb[2].mxu0  ;;  %v1845_v57 = vadd.f32 %v537_v54, %v337_v40 }
 0x12c   : > { %v1847_v58 = vadd.f32 %v1372_v55, %v352_v46  ;;  %v540_v59 = vpop.f32.mrb[3].mxu0  ;;  %v618_v60 = vmul.f32 %v1843_v53, %v1843_v53 }
 0x12d   : > { %v1851_v61 = vadd.f32 %v540_v59, %v342_v42  ;;  %v616_v2 = vmul.f32 %v1845_v57, %v1845_v57 }
 0x12e   : > { %v698_v62 = vpack.c.bf16 %v1847_v58, %v1843_v53  ;;  %636 = vadd.xlane.f32.xlu0 %v618_v60  ;;  %v619_v12 = vmul.f32 %v1847_v58, %v1847_v58  ;;  %v603_v58 = vld [vmem:[#allocation2 + $0x18] sm:$0xff] }
 0x12f   : > { %v697_v63 = vpack.c.bf16 %v1851_v61, %v1845_v57  ;;  %v617_v1 = vmul.f32 %v1851_v61, %v1851_v61  ;;  %v606_v57 = vld [vmem:[#allocation2 + $0x30] sm:$0xff] }
 0x131   : > { %v1375_v3 = vpop.f32.mrb[4].mxu0  ;;  %634 = vadd.xlane.f32.xlu1 %v617_v1 }
 0x132   : > { %v1861_v5 = vadd.f32 %v1375_v3, %v367_v0  ;;  %v553_v6 = vpop.f32.mrb[5].mxu0  ;;  %632 = vadd.xlane.f32.xlu0 %v616_v2 }
 0x133   : > { %v1376_v7 = vpop.f32.mrb[6].mxu0  ;;  %v554_v8 = vadd.f32 %v553_v6, %v357_v49 }
 0x134   : > { %v1863_v9 = vadd.f32 %v1376_v7, %v372_v4  ;;  %v556_v10 = vpop.f32.mrb[7].mxu0  ;;  %v622_v11 = vmul.f32 %v1861_v5, %v1861_v5  ;;  %v610_v4 = vld [vmem:[#allocation2 + $0x50] sm:$0xff] }
 0x135   : > { %v557_v13 = vadd.f32 %v556_v10, %v362_v50  ;;  %v620_v16 = vmul.f32 %v554_v8, %v554_v8  ;;  %v608_v10 = vld [vmem:[#allocation2 + $0x40] sm:$0xff] }
 0x136   : > { %v700_v14 = vpack.c.bf16 %v1863_v9, %v1861_v5  ;;  %644 = vadd.xlane.f32.xlu1 %v622_v11  ;;  %638 = vadd.xlane.f32.xlu0 %v619_v12  ;;  %v623_v17 = vmul.f32 %v1863_v9, %v1863_v9  ;;  %v605_v5 = vld [vmem:[#allocation2 + $0x28] sm:$0xff]  ;;  %v611_v11 = vld [vmem:[#allocation2 + $0x58] sm:$0xff] }
 0x137   : > { %v699_v15 = vpack.c.bf16 %v557_v13, %v554_v8  ;;  %v621_v26 = vmul.f32 %v557_v13, %v557_v13 }
 0x139   : > { %v1379_v18 = vpop.f32.mrb[8].mxu0 }
 0x13a   : > { %v578_v19 = vadd.f32 %v1379_v18, %v387_v43  ;;  %v569_v20 = vpop.f32.mrb[9].mxu0  ;;  %640 = vadd.xlane.f32.xlu1 %v620_v16  ;;  %646 = vadd.xlane.f32.xlu0 %v623_v17  ;;  %v609_v16 = vld [vmem:[#allocation2 + $0x48] sm:$0xff]  ;;  %v612_v17 = vld [vmem:[#allocation2 + $0x60] sm:$0xff] }
 0x13b   : > { %v1380_v21 = vpop.f32.mrb[10].mxu0  ;;  %v570_v22 = vadd.f32 %v569_v20, %v377_v39 }
 0x13c   : > { %v581_v23 = vadd.f32 %v1380_v21, %v392_v44  ;;  %v572_v24 = vpop.f32.mrb[11].mxu0  ;;  %v626_v25 = vmul.f32 %v578_v19, %v578_v19 }
 0x13d   : > { %v573_v27 = vadd.f32 %v572_v24, %v382_v41  ;;  %v624_v30 = vmul.f32 %v570_v22, %v570_v22 }
 0x13e   : > { %v702_v28 = vpack.c.bf16 %v581_v23, %v578_v19  ;;  %652 = vadd.xlane.f32.xlu1 %v626_v25  ;;  %642 = vadd.xlane.f32.xlu0 %v621_v26  ;;  %v627_v31 = vmul.f32 %v581_v23, %v581_v23  ;;  %v614_v23 = vld [vmem:[#allocation2 + $0x70] sm:$0xff] }
 0x13f   : > { %v701_v29 = vpack.c.bf16 %v573_v27, %v570_v22  ;;  %v625_v40 = vmul.f32 %v573_v27, %v573_v27  ;;  %v613_v22 = vld [vmem:[#allocation2 + $0x68] sm:$0xff] }
 0x141   : > { %v1383_v32 = vpop.f32.mrb[12].mxu0  ;;  %1386 = vmatpush3.bf16.xpose.msra.mxu1 %v701_v29 }
 0x142   : > { %v585_v33 = vpop.f32.mrb[13].mxu0  ;;  %648 = vadd.xlane.f32.xlu1 %v624_v30  ;;  %654 = vadd.xlane.f32.xlu0 %v627_v31  ;;  %v594_v36 = vadd.f32 %v1383_v32, %v407_v52  ;;  %v600_v52 = vld [vmem:[#allocation2] sm:$0xff] }
 0x143   : > { %v586_v34 = vadd.f32 %v585_v33, %v1839_v47  ;;  %v1384_v35 = vpop.f32.mrb[14].mxu0  ;;  %1391 = vmatprep.subr.bf16.mxu1 %v1624_v38  ;;  %v705_v31 = vld [vmem:[#allocation3] sm:$0xff]  ;;  %v706_v33 = vld [vmem:[#allocation3 + $0x8] sm:$0xff] }
 0x144   : > { %v597_v37 = vadd.f32 %v1384_v35, %v412_v56  ;;  %v588_v39 = vpop.f32.mrb[15].mxu0  ;;  %v630_v46 = vmul.f32 %v594_v36, %v594_v36 }
 0x145   : > { %v589_v41 = vadd.f32 %v588_v39, %v1841_v48  ;;  %v628_v42 = vmul.f32 %v586_v34, %v586_v34  ;;  %v602_v48 = vld [vmem:[#allocation2 + $0x10] sm:$0xff] }
 0x146   : > { %v704_v43 = vpack.c.bf16 %v597_v37, %v594_v36  ;;  %650 = vadd.xlane.f32.xlu0 %v625_v40  ;;  %v631_v47 = vmul.f32 %v597_v37, %v597_v37  ;;  %v753_v40 = vld [vmem:[#allocation3 + $0x10] sm:$0xff] }
 0x147   : > { %v703_v44 = vpack.c.bf16 %v589_v41, %v586_v34  ;;  %656 = vadd.xlane.f32.xlu1 %v628_v42  ;;  %v629_v45 = vmul.f32 %v589_v41, %v589_v41  ;;  %v754_v42 = vld [vmem:[#allocation3 + $0x18] sm:$0xff] }
 0x148   : > { %1388 = vmatmul.mubr.bf16.vlgmr.msra.gmra.mrb[0].mxu1 %v697_v63  ;;  %v607_v63 = vld [vmem:[#allocation2 + $0x38] sm:$0xff] }
 0x149   : > { %1392 = vmatpush3.bf16.xpose.msra.mxu1 %v702_v28  ;;  %1393 = vmatprep.mubr.msk.bf16.mxu1 %vm1625_vm3, %v1624_v38  ;;  %v615_v28 = vld [vmem:[#allocation2 + $0x78] sm:$0xff] }
 0x14a   : > { %658 = vadd.xlane.f32.xlu0 %v629_v45  ;;  %1397 = vmatprep.subr.bf16.mxu1 %v1624_v38 }
 0x14b   : > { %660 = vadd.xlane.f32.xlu1 %v630_v46 }
 0x14e   : > { %662 = vadd.xlane.f32.xlu0 %v631_v47 }
 0x150   : > { %1394 = vmatmul.mubr.bf16.vlgmr.msra.gmra.mrb[4].mxu1 %v698_v62  ;;  %v604_v62 = vld [vmem:[#allocation2 + $0x20] sm:$0xff] }
 0x151   : > { %1398 = vmatpush3.bf16.xpose.msra.mxu1 %v703_v44  ;;  %1399 = vmatprep.mubr.msk.bf16.mxu1 %vm1625_vm3, %v1624_v38 }
 0x152   : > { %1403 = vmatprep.subr.bf16.mxu1 %v1624_v38 }
 0x158   : > { %1400 = vmatmul.mubr.bf16.vlgmr.msra.gmra.mrb[8].mxu1 %v699_v15 }
 0x159   : > { %1404 = vmatpush3.bf16.xpose.msra.mxu1 %v704_v43  ;;  %1405 = vmatprep.mubr.msk.bf16.mxu1 %vm1625_vm3, %v1624_v38 }
 0x160   : > { %1406 = vmatmul.mubr.bf16.vlgmr.msra.gmra.mrb[12].mxu1 %v700_v14 }
 0x1bb   : > { %v637_v49 = vpop.xlane.xlu0 %636 }
 0x1bc   : > { %v666_v50 = vadd.f32 %v637_v49, %v602_v48  ;;  %v800_v48 = vld [vmem:[#allocation3 + $0x20] sm:$0xff] }
 0x1be   : > { %683 = vst.msk [vmem:[#allocation2 + $0x10] sm:$0xff] %vm680_vm4, %v666_v50  ;;  %v635_v53 = vpop.xlane.xlu1 %634  ;;  %v801_v50 = vld [vmem:[#allocation3 + $0x28] sm:$0xff] }
 0x1bf   : > { %v665_v54 = vadd.f32 %v635_v53, %v601_v51  ;;  %v633_v55 = vpop.xlane.xlu0 %632 }
 0x1c0   : > { %v664_v56 = vadd.f32 %v633_v55, %v600_v52 }
 0x1c1   : > { %682 = vst.msk [vmem:[#allocation2 + $0x8] sm:$0xff] %vm680_vm4, %v665_v54 }
 0x1c2   : > { %681 = vst.msk [vmem:[#allocation2] sm:$0xff] %vm680_vm4, %v664_v56  ;;  %v847_v56 = vld [vmem:[#allocation3 + $0x30] sm:$0xff] }
 0x1c3   : > { %v645_v38 = vpop.xlane.xlu1 %644  ;;  %v639_v59 = vpop.xlane.xlu0 %638 }
 0x1c4   : > { %v670_v60 = vadd.f32 %v645_v38, %v606_v57  ;;  %v667_v61 = vadd.f32 %v639_v59, %v603_v58  ;;  %v848_v58 = vld [vmem:[#allocation3 + $0x38] sm:$0xff] }
 0x1c6   : > { %687 = vst.msk [vmem:[#allocation2 + $0x30] sm:$0xff] %vm680_vm4, %v670_v60  ;;  %684 = vst.msk [vmem:[#allocation2 + $0x18] sm:$0xff] %vm680_vm4, %v667_v61 }
 0x1c7   : > { %v641_v0 = vpop.xlane.xlu1 %640  ;;  %v647_v1 = vpop.xlane.xlu0 %646 }
 0x1c8   : > { %v668_v2 = vadd.f32 %v641_v0, %v604_v62  ;;  %v671_v3 = vadd.f32 %v647_v1, %v607_v63 }
 0x1ca   : > { %685 = vst.msk [vmem:[#allocation2 + $0x20] sm:$0xff] %vm680_vm4, %v668_v2  ;;  %688 = vst.msk [vmem:[#allocation2 + $0x38] sm:$0xff] %vm680_vm4, %v671_v3  ;;  %v1626_v2 = vmov (!%p1334_p3), 0  }
 0x1cb   : > { %v653_v6 = vpop.xlane.xlu1 %652  ;;  %v643_v7 = vpop.xlane.xlu0 %642  ;;  %1486 = vset.pattern.permute.xlu1 (!%p1334_p3), %v1626_v2  ;;  %1485 = vset.pattern.permute.xlu0 (!%p1334_p3), %v1626_v2 }
 0x1cc   : > { %v674_v8 = vadd.f32 %v653_v6, %v610_v4  ;;  %v669_v9 = vadd.f32 %v643_v7, %v605_v5 }
 0x1ce   : > { %691 = vst.msk [vmem:[#allocation2 + $0x50] sm:$0xff] %vm680_vm4, %v674_v8  ;;  %686 = vst.msk [vmem:[#allocation2 + $0x28] sm:$0xff] %vm680_vm4, %v669_v9 }
 0x1cf   : > { %v649_v12 = vpop.xlane.xlu1 %648  ;;  %v655_v13 = vpop.xlane.xlu0 %654 }
 0x1d0   : > { %v672_v14 = vadd.f32 %v649_v12, %v608_v10  ;;  %v675_v15 = vadd.f32 %v655_v13, %v611_v11 }
 0x1d2   : > { %689 = vst.msk [vmem:[#allocation2 + $0x40] sm:$0xff] %vm680_vm4, %v672_v14  ;;  %692 = vst.msk [vmem:[#allocation2 + $0x58] sm:$0xff] %vm680_vm4, %v675_v15 }
 0x1d3   : > { %v651_v18 = vpop.xlane.xlu0 %650 }
 0x1d4   : > { %v673_v19 = vadd.f32 %v651_v18, %v609_v16  ;;  %v657_v20 = vpop.xlane.xlu1 %656  ;;  %v899_v16 = vld [vmem:[#allocation2 + $0x8] sm:$0xff] (!%p1334_p3) }
 0x1d5   : > { %v676_v21 = vadd.f32 %v657_v20, %v612_v17  ;;  %v908_v63 = vld [vmem:[#allocation2 + $0x50] sm:$0xff] (!%p1334_p3)  ;;  %v898_v17 = vld [vmem:[#allocation2] sm:$0xff] (!%p1334_p3) }
 0x1d6   : > { %690 = vst.msk [vmem:[#allocation2 + $0x48] sm:$0xff] %vm680_vm4, %v673_v19  ;;  %v924_v3 = vmax.f32 (!%p1334_p3), %v908_v63, 1e-24  ;;  %v915_v19 = vmax.f32 (!%p1334_p3), %v899_v16, 1e-24 }
 0x1d7   : > { %693 = vst.msk [vmem:[#allocation2 + $0x60] sm:$0xff] %vm680_vm4, %v676_v21  ;;  %v659_v24 = vpop.xlane.xlu0 %658  ;;  %v914_v21 = vmax.f32 (!%p1334_p3), %v898_v17, 1e-24 }
 0x1d8   : > { %v677_v25 = vadd.f32 %v659_v24, %v613_v22  ;;  %v661_v26 = vpop.xlane.xlu1 %660  ;;  %1487 = vrsqrt.f32 (!%p1334_p3), %v924_v3  ;;  %v901_v22 = vld [vmem:[#allocation2 + $0x18] sm:$0xff] (!%p1334_p3)  ;;  %v900_v24 = vld [vmem:[#allocation2 + $0x10] sm:$0xff] (!%p1334_p3) }
 0x1d9   : > { %v678_v27 = vadd.f32 %v661_v26, %v614_v23  ;;  %v906_v0 = vld [vmem:[#allocation2 + $0x40] sm:$0xff] (!%p1334_p3)  ;;  %v909_v1 = vld [vmem:[#allocation2 + $0x58] sm:$0xff] (!%p1334_p3)  ;;  %v917_v26 = vmax.f32 (!%p1334_p3), %v901_v22, 1e-24  ;;  %v1069_v22 = vstv (!%p1334_p3), %s1921_s16 }
 0x1da   : > { %694 = vst.msk [vmem:[#allocation2 + $0x68] sm:$0xff] %vm680_vm4, %v677_v25  ;;  %v922_v4 = vmax.f32 (!%p1334_p3), %v906_v0, 1e-24  ;;  %v925_v5 = vmax.f32 (!%p1334_p3), %v909_v1, 1e-24 }
 0x1db   : > { %695 = vst.msk [vmem:[#allocation2 + $0x70] sm:$0xff] %vm680_vm4, %v678_v27  ;;  %v663_v29 = vpop.xlane.xlu0 %662  ;;  %v916_v27 = vmax.f32 (!%p1334_p3), %v900_v24, 1e-24 }
 0x1dc   : > { %v679_v30 = vadd.f32 %v663_v29, %v615_v28  ;;  %1489 = vrsqrt.f32 (!%p1334_p3), %v922_v4  ;;  %v903_v28 = vld [vmem:[#allocation2 + $0x28] sm:$0xff] (!%p1334_p3) }
 0x1dd   : > { %v907_v6 = vld [vmem:[#allocation2 + $0x48] sm:$0xff] (!%p1334_p3)  ;;  %1491 = vrsqrt.f32 (!%p1334_p3), %v925_v5  ;;  %v1003_v5 = vstv (!%p1334_p3), %s1912_s22 }
 0x1de   : > { %696 = vst.msk [vmem:[#allocation2 + $0x78] sm:$0xff] %vm680_vm4, %v679_v30  ;;  %v923_v8 = vmax.f32 (!%p1334_p3), %v907_v6, 1e-24  ;;  %v910_v9 = vld [vmem:[#allocation2 + $0x60] sm:$0xff] (!%p1334_p3) }
 0x1df   : > { %v926_v11 = vmax.f32 (!%p1334_p3), %v910_v9, 1e-24  ;;  %v902_v30 = vld [vmem:[#allocation2 + $0x20] sm:$0xff] (!%p1334_p3) }
 0x1e0   : > { %1493 = vrsqrt.f32 (!%p1334_p3), %v923_v8 }
 0x1e1   : > { %v911_v7 = vld [vmem:[#allocation2 + $0x68] sm:$0xff] (!%p1334_p3) }
 0x1e2   : > { %v927_v10 = vmax.f32 (!%p1334_p3), %v911_v7, 1e-24  ;;  %v912_v13 = vld [vmem:[#allocation2 + $0x70] sm:$0xff] (!%p1334_p3)  ;;  %v1488_v18 = vpop.eup (!%p1334_p3), %1487 }
 0x1e3   : > { %v928_v15 = vmax.f32 (!%p1334_p3), %v912_v13, 1e-24  ;;  %1045 = vperm.xlu1 (!%p1334_p3), %1486, %v1488_v18  }
 0x1e4   : > { %1495 = vrsqrt.f32 (!%p1334_p3), %v927_v10 }
 0x1e5   : > { %v913_v12 = vld [vmem:[#allocation2 + $0x78] sm:$0xff] (!%p1334_p3)  ;;  %1497 = vrsqrt.f32 (!%p1334_p3), %v926_v11 }
 0x1e6   : > { %v929_v14 = vmax.f32 (!%p1334_p3), %v913_v12, 1e-24  ;;  %v1490_v20 = vpop.eup (!%p1334_p3), %1489 }
 0x1e7   : > { %v1492_v23 = vpop.eup (!%p1334_p3), %1491  ;;  %969 = vperm.xlu0 (!%p1334_p3), %1485, %v1490_v20  }
 0x1e8   : > { %1499 = vrsqrt.f32 (!%p1334_p3), %v929_v14  ;;  %1048 = vperm.xlu1 (!%p1334_p3), %1486, %v1492_v23  }
 0x1e9   : > { %1501 = vrsqrt.f32 (!%p1334_p3), %v928_v15 }
 0x1ea   : > { %v1494_v25 = vpop.eup (!%p1334_p3), %1493  ;;  %1503 = vrsqrt.f32 (!%p1334_p3), %v915_v19 }
 0x1eb   : > { %1505 = vrsqrt.f32 (!%p1334_p3), %v914_v21  ;;  %972 = vperm.xlu0 (!%p1334_p3), %1485, %v1494_v25  }
 0x1ec   : > { %1507 = vrsqrt.f32 (!%p1334_p3), %v917_v26 }
 0x1ed   : > { %1509 = vrsqrt.f32 (!%p1334_p3), %v916_v27 }
 0x1ee   : > { %v1496_v29 = vpop.eup (!%p1334_p3), %1495 }
 0x1ef   : > { %1114 = vperm.xlu1 (!%p1334_p3), %1486, %v1496_v29  }
 0x21b   : > { %v741_v32 = vpop.f32.mrb[0].mxu1 }
 0x21c   : > { %v748_v34 = vadd.f32 %v741_v32, %v705_v31  ;;  %v1389_v35 = vpop.f32.mrb[1].mxu1  ;;  %v1498_v31 = vpop.eup (!%p1334_p3), %1497  ;;  %v919_v32 = vmax.f32 (!%p1334_p3), %v903_v28, 1e-24 }
 0x21d   : > { %v744_v36 = vpop.f32.mrb[2].mxu1  ;;  %v1500_v35 = vpop.eup (!%p1334_p3), %1499  ;;  %1111 = vperm.xlu0 (!%p1334_p3), %1485, %v1498_v31  }
 0x21e   : > { %751 = vst.msk [vmem:[#allocation3] sm:$0xff] %vm750_vm5, %v748_v34  ;;  %v749_v37 = vadd.f32 %v744_v36, %v706_v33  ;;  %v1390_v39 = vpop.f32.mrb[3].mxu1  ;;  %v918_v33 = vmax.f32 (!%p1334_p3), %v902_v30, 1e-24  ;;  %v905_v34 = vld [vmem:[#allocation2 + $0x38] sm:$0xff] (!%p1334_p3)  ;;  %v904_v36 = vld [vmem:[#allocation2 + $0x30] sm:$0xff] (!%p1334_p3)  ;;  %1511 = vrsqrt.f32 (!%p1334_p3), %v919_v32  ;;  %1180 = vperm.xlu1 (!%p1334_p3), %1486, %v1500_v35  }
 0x21f   : > { %v921_v39 = vmax.f32 (!%p1334_p3), %v905_v34, 1e-24 }
 0x220   : > { %752 = vst.msk [vmem:[#allocation3 + $0x8] sm:$0xff] %vm750_vm5, %v749_v37  ;;  %v1502_v37 = vpop.eup (!%p1334_p3), %1501  ;;  %1513 = vrsqrt.f32 (!%p1334_p3), %v918_v33 }
 0x221   : > { %1177 = vperm.xlu0 (!%p1334_p3), %1485, %v1502_v37   ;;  %1515 = vrsqrt.f32 (!%p1334_p3), %v921_v39 }
 0x223   : > { %v789_v41 = vpop.f32.mrb[4].mxu1 }
 0x224   : > { %v796_v43 = vadd.f32 %v789_v41, %v753_v40  ;;  %v1395_v44 = vpop.f32.mrb[5].mxu1  ;;  %v920_v40 = vmax.f32 (!%p1334_p3), %v904_v36, 1e-24  ;;  %v1504_v41 = vpop.eup (!%p1334_p3), %1503  ;;  %v1135_v36 = vstv (!%p1334_p3), %s1928_s17 }
 0x225   : > { %v792_v45 = vpop.f32.mrb[6].mxu1  ;;  %961 = vperm.xlu1 (!%p1334_p3), %1486, %v1504_v41   ;;  %v946_v0 = vld [vmem:[#allocation3] sm:$0xff] (!%p1334_p3) }
 0x226   : > { %798 = vst.msk [vmem:[#allocation3 + $0x10] sm:$0xff] %vm750_vm5, %v796_v43  ;;  %v797_v46 = vadd.f32 %v792_v45, %v754_v42  ;;  %v1396_v47 = vpop.f32.mrb[7].mxu1  ;;  %v1506_v42 = vpop.eup (!%p1334_p3), %1505  ;;  %1517 = vrsqrt.f32 (!%p1334_p3), %v920_v40 }
 0x227   : > { %v1508_v43 = vpop.eup (!%p1334_p3), %1507  ;;  %956 = vperm.xlu0 (!%p1334_p3), %1485, %v1506_v42   ;;  %v947_v63 = vld [vmem:[#allocation3 + $0x8] sm:$0xff] (!%p1334_p3) }
 0x228   : > { %799 = vst.msk [vmem:[#allocation3 + $0x18] sm:$0xff] %vm750_vm5, %v797_v46  ;;  %v1510_v44 = vpop.eup (!%p1334_p3), %1509 }
 0x229   : > { %1037 = vperm.xlu1 (!%p1334_p3), %1486, %v1508_v43   ;;  %v1512_v45 = vpop.eup (!%p1334_p3), %1511 }
 0x22a   : > { %v1514_v46 = vpop.eup (!%p1334_p3), %1513 }
 0x22b   : > { %v836_v49 = vpop.f32.mrb[8].mxu1  ;;  %1032 = vperm.xlu0 (!%p1334_p3), %1485, %v1510_v44   ;;  %v1516_v47 = vpop.eup (!%p1334_p3), %1515 }
 0x22c   : > { %v843_v51 = vadd.f32 %v836_v49, %v800_v48  ;;  %v1401_v52 = vpop.f32.mrb[9].mxu1  ;;  %v974_v49 = vlaneseq (!%p1334_p3) }
 0x22d   : > { %v839_v53 = vpop.f32.mrb[10].mxu1  ;;  %1103 = vperm.xlu1 (!%p1334_p3), %1486, %v1512_v45   ;;  %v948_v12 = vld [vmem:[#allocation3 + $0x10] sm:$0xff] (!%p1334_p3) }
 0x22e   : > { %845 = vst.msk [vmem:[#allocation3 + $0x20] sm:$0xff] %vm750_vm5, %v843_v51  ;;  %v844_v54 = vadd.f32 %v839_v53, %v801_v50  ;;  %v1402_v55 = vpop.f32.mrb[11].mxu1  ;;  %v975_v52 = vand.u32 (!%p1334_p3), 127, %v974_v49 }
 0x22f   : > { %1098 = vperm.xlu0 (!%p1334_p3), %1485, %v1514_v46   ;;  %v949_v10 = vld [vmem:[#allocation3 + $0x18] sm:$0xff] (!%p1334_p3) }
 0x230   : > { %846 = vst.msk [vmem:[#allocation3 + $0x28] sm:$0xff] %vm750_vm5, %v844_v54  ;;  %v1518_v48 = vpop.eup (!%p1334_p3), %1517  ;;  %v980_v55 = vadd.s32 (!%p1334_p3), 4294967288, %v975_v52 }
 0x231   : > { %1169 = vperm.xlu1 (!%p1334_p3), %1486, %v1516_v47  }
 0x232   : > { %897 = sbr.rel (%p1334_p3) target bundleno = 1017 (0x3f9), region = 81 }
 0x233   : > { %v883_v57 = vpop.f32.mrb[12].mxu1  ;;  %1164 = vperm.xlu0 (!%p1334_p3), %1485, %v1518_v48  }
 0x234   : > { %v890_v38 = vadd.f32 %v883_v57, %v847_v56  ;;  %v1407_v59 = vpop.f32.mrb[13].mxu1  ;;  %v977_v56 = vshrl.u32 (!%p1334_p3), %v974_v49, 7 }
 0x235   : > { %v886_v60 = vpop.f32.mrb[14].mxu1  ;;  %v950_v27 = vld [vmem:[#allocation3 + $0x20] sm:$0xff] (!%p1334_p3) }
 0x236   : > { %892 = vst.msk [vmem:[#allocation3 + $0x30] sm:$0xff] %vm750_vm5, %v890_v38  ;;  %v891_v61 = vadd.f32 %v886_v60, %v848_v58  ;;  %v1408_v62 = vpop.f32.mrb[15].mxu1  ;;  %v1914_v38 = vsub.s32 (!%p1334_p3), %v980_v55, %v977_v56  ;;  %v1916_v59 = vsub.s32 (!%p1334_p3), %v975_v52, %v977_v56 }
 0x237   : > { %v951_v20 = vld [vmem:[#allocation3 + $0x28] sm:$0xff] (!%p1334_p3) }
 0x238   : > { %893 = vst.msk [vmem:[#allocation3 + $0x38] sm:$0xff] %vm750_vm5, %v891_v61 }
 0x23d   : > { %v952_v41 = vld [vmem:[#allocation3 + $0x30] sm:$0xff] }
 0x23f   : > { %v953_v34 = vld [vmem:[#allocation3 + $0x38] sm:$0xff] }
 0x262   : > { %v1046_v50 = vpop.permute.xlu1 %1045 }
 0x263   : > { %v1053_v6 = vrot.slane %v1046_v50, %v1916_v59 }
 0x266   : > { %v970_v51 = vpop.permute.xlu0 %969 }
 0x267   : > { %v1049_v53 = vpop.permute.xlu1 %1048  ;;  %v979_v1 = vrot.slane %v970_v51, %v1916_v59 }
 0x268   : > { %v1057_v7 = vrot.slane %v1049_v53, %v1914_v38  ;;  %v1201_v53 = vstv %s1935_s18 }
 0x26a   : > { %v973_v54 = vpop.permute.xlu0 %972  ;;  %v1058_v18 = vsel %vm985_vm6, %v1057_v7, %v1053_v6 }
 0x26b   : > { %v984_v62 = vrot.slane %v973_v54, %v1914_v38 }
 0x26d   : > { %v986_v8 = vsel %vm985_vm6, %v984_v62, %v979_v1 }
 0x26e   : > { %v1115_v57 = vpop.permute.xlu1 %1114 }
 0x26f   : > { %v1123_v23 = vrot.slane %v1115_v57, %v1914_v38 }
 0x29c   : > { %v1112_v58 = vpop.permute.xlu0 %1111 }
 0x29d   : > { %v1918_v60 = vpop.permute.xlu1 %1180  ;;  %v1119_v24 = vrot.slane %v1112_v58, %v1916_v59 }
 0x29e   : > { %v1189_v37 = vrot.slane %v1918_v60, %v1914_v38 }
 0x29f   : > { %v1124_v40 = vsel %vm985_vm6, %v1123_v23, %v1119_v24 }
 0x2a0   : > { %v1178_v61 = vpop.permute.xlu0 %1177 }
 0x2a1   : > { %v1185_v39 = vrot.slane %v1178_v61, %v1916_v59 }
 0x2a3   : > { %v1190_v51 = vsel %vm985_vm6, %v1189_v37, %v1185_v39 }
 0x2a4   : > { %v962_v2 = vpop.permute.xlu1 %961 }
 0x2a5   : > { %v965_v3 = vmul.f32 %v962_v2, %v947_v63 }
 0x2a6   : > { %v957_v4 = vpop.permute.xlu0 %956 }
 0x2a7   : > { %v964_v9 = vmul.f32 %v957_v4, %v946_v0  ;;  %v1001_v11 = vmul.f32 %v986_v8, %v965_v3 }
 0x2a8   : > { %v1038_v14 = vpop.permute.xlu1 %1037 }
 0x2a9   : > { %v1000_v13 = vmul.f32 %v986_v8, %v964_v9  ;;  %v1041_v15 = vmul.f32 %v1038_v14, %v949_v10  ;;  %v1005_v17 = vmul.f32 %v1003_v5, %v1001_v11 }
 0x2aa   : > { %v1033_v16 = vpop.permute.xlu0 %1032 }
 0x2ab   : > { %v1040_v19 = vmul.f32 %v1033_v16, %v948_v12  ;;  %v1004_v21 = vmul.f32 %v1003_v5, %v1000_v13  ;;  %v1067_v25 = vmul.f32 %v1058_v18, %v1041_v15  ;;  %v1009_v26 = vsel %vm750_vm5, %v1005_v17, -inf }
 0x2ac   : > { %1010 = vmax.xlane.f32.xlu1 %v1009_v26  ;;  %v1104_v29 = vpop.permute.xlu1 %1103 }
 0x2ad   : > { %v1066_v28 = vmul.f32 %v1058_v18, %v1040_v19  ;;  %v1006_v30 = vsel %vm750_vm5, %v1004_v21, -inf  ;;  %v1107_v31 = vmul.f32 %v1104_v29, %v951_v20  ;;  %v1071_v42 = vmul.f32 %v1069_v22, %v1067_v25 }
 0x2ae   : > { %1007 = vmax.xlane.f32.xlu0 %v1006_v30  ;;  %v1099_v32 = vpop.permute.xlu0 %1098 }
 0x2af   : > { %v1106_v33 = vmul.f32 %v1099_v32, %v950_v27  ;;  %v1070_v35 = vmul.f32 %v1069_v22, %v1066_v28  ;;  %v1133_v43 = vmul.f32 %v1124_v40, %v1107_v31  ;;  %v1075_v52 = vsel %vm750_vm5, %v1071_v42, -inf }
 0x2b0   : > { %v1170_v45 = vpop.permute.xlu1 %1169 }
 0x2b1   : > { %v1132_v44 = vmul.f32 %v1124_v40, %v1106_v33  ;;  %v1072_v46 = vsel %vm750_vm5, %v1070_v35, -inf  ;;  %v1173_v47 = vmul.f32 %v1170_v45, %v953_v34  ;;  %v1137_v57 = vmul.f32 %v1135_v36, %v1133_v43 }
 0x2b2   : > { %1073 = vmax.xlane.f32.xlu0 %v1072_v46  ;;  %v1165_v48 = vpop.permute.xlu0 %1164 }
 0x2b3   : > { %v1172_v49 = vmul.f32 %v1165_v48, %v952_v41  ;;  %v1136_v50 = vmul.f32 %v1135_v36, %v1132_v44  ;;  %v1199_v54 = vmul.f32 %v1190_v51, %v1173_v47  ;;  %v1141_v38 = vsel %vm750_vm5, %v1137_v57, -inf }
 0x2b5   : > { %v1198_v55 = vmul.f32 %v1190_v51, %v1172_v49  ;;  %v1138_v56 = vsel %vm750_vm5, %v1136_v50, -inf  ;;  %v1203_v60 = vmul.f32 %v1201_v53, %v1199_v54 }
 0x2b6   : > { %1076 = vmax.xlane.f32.xlu0 %v1075_v52  ;;  %1139 = vmax.xlane.f32.xlu1 %v1138_v56 }
 0x2b7   : > { %v1202_v58 = vmul.f32 %v1201_v53, %v1198_v55  ;;  %v1207_v61 = vsel %vm750_vm5, %v1203_v60, -inf }
 0x2b9   : > { %v1204_v59 = vsel %vm750_vm5, %v1202_v58, -inf }
 0x2ba   : > { %1142 = vmax.xlane.f32.xlu0 %v1141_v38  ;;  %1205 = vmax.xlane.f32.xlu1 %v1204_v59 }
 0x2be   : > { %1208 = vmax.xlane.f32.xlu0 %v1207_v61 }
 0x339   : > { %v1011_v62 = vpop.xlane.xlu1 %1010 }
 0x33a   : > { %v1013_v63 = vsub.f32 %v1005_v17, %v1011_v62 }
 0x33b   : > { %v1008_v0 = vpop.xlane.xlu0 %1007 }
 0x33c   : > { %v1012_v1 = vsub.f32 %v1004_v21, %v1008_v0  ;;  %v1016_v2 = vmul.f32 1.442695, %v1013_v63 }
 0x33e   : > { %v1014_v3 = vmul.f32 1.442695, %v1012_v1  ;;  %1519 = vpow2.f32 %v1016_v2 }
 0x33f   : > { %v1074_v4 = vpop.xlane.xlu0 %1073 }
 0x340   : > { %1521 = vpow2.f32 %v1014_v3  ;;  %v1078_v5 = vsub.f32 %v1070_v35, %v1074_v4 }
 0x342   : > { %v1080_v6 = vmul.f32 1.442695, %v1078_v5 }
 0x343   : > { %v1140_v7 = vpop.xlane.xlu1 %1139  ;;  %v1077_v8 = vpop.xlane.xlu0 %1076 }
 0x344   : > { %1523 = vpow2.f32 %v1080_v6  ;;  %v1144_v9 = vsub.f32 %v1136_v50, %v1140_v7  ;;  %v1079_v10 = vsub.f32 %v1071_v42, %v1077_v8 }
 0x346   : > { %v1146_v11 = vmul.f32 1.442695, %v1144_v9  ;;  %v1082_v12 = vmul.f32 1.442695, %v1079_v10 }
 0x347   : > { %v1206_v13 = vpop.xlane.xlu1 %1205  ;;  %v1143_v14 = vpop.xlane.xlu0 %1142 }
 0x348   : > { %1525 = vpow2.f32 %v1146_v11  ;;  %v1210_v15 = vsub.f32 %v1202_v58, %v1206_v13  ;;  %v1145_v16 = vsub.f32 %v1137_v57, %v1143_v14  ;;  %v1520_v17 = vpop.eup %1519 }
 0x349   : > { %1527 = vpow2.f32 %v1082_v12  ;;  %v1021_v21 = vsel %vm750_vm5, %v1520_v17, 0.0 }
 0x34a   : > { %v1522_v18 = vpop.eup %1521  ;;  %v1212_v19 = vmul.f32 1.442695, %v1210_v15  ;;  %v1148_v20 = vmul.f32 1.442695, %v1145_v16  ;;  %1022 = vadd.xlane.f32.xlu0 %v1021_v21 }
 0x34b   : > { %v1209_v22 = vpop.xlane.xlu0 %1208  ;;  %v1018_v23 = vsel %vm750_vm5, %v1522_v18, 0.0 }
 0x34c   : > { %1529 = vpow2.f32 %v1212_v19  ;;  %v1211_v24 = vsub.f32 %v1203_v60, %v1209_v22  ;;  %1019 = vadd.xlane.f32.xlu1 %v1018_v23 }
 0x34d   : > { %1531 = vpow2.f32 %v1148_v20 }
 0x34e   : > { %v1524_v25 = vpop.eup %1523  ;;  %v1214_v26 = vmul.f32 1.442695, %v1211_v24 }
 0x34f   : > { %v1084_v27 = vsel %vm750_vm5, %v1524_v25, 0.0 }
 0x350   : > { %1533 = vpow2.f32 %v1214_v26  ;;  %1085 = vadd.xlane.f32.xlu1 %v1084_v27 }
 0x352   : > { %v1526_v28 = vpop.eup %1525 }
 0x353   : > { %v1528_v29 = vpop.eup %1527  ;;  %v1150_v30 = vsel %vm750_vm5, %v1526_v28, 0.0 }
 0x354   : > { %1151 = vadd.xlane.f32.xlu1 %v1150_v30  ;;  %v1087_v31 = vsel %vm750_vm5, %v1528_v29, 0.0 }
 0x355   : > { %1088 = vadd.xlane.f32.xlu0 %v1087_v31 }
 0x356   : > { %v1530_v32 = vpop.eup %1529 }
 0x357   : > { %v1532_v33 = vpop.eup %1531  ;;  %v1216_v34 = vsel %vm750_vm5, %v1530_v32, 0.0 }
 0x358   : > { %1217 = vadd.xlane.f32.xlu1 %v1216_v34  ;;  %v1153_v35 = vsel %vm750_vm5, %v1532_v33, 0.0 }
 0x359   : > { %1154 = vadd.xlane.f32.xlu0 %v1153_v35 }
 0x35a   : > { %v1534_v36 = vpop.eup %1533 }
 0x35b   : > { %v1219_v37 = vsel %vm750_vm5, %v1534_v36, 0.0 }
 0x35d   : > { %1220 = vadd.xlane.f32.xlu0 %v1219_v37 }
 0x3d7   : > { %v1023_v39 = vpop.xlane.xlu0 %1022 }
 0x3d8   : > { %1535 = vrcp.f32 %v1023_v39 }
 0x3d9   : > { %v1020_v40 = vpop.xlane.xlu1 %1019 }
 0x3da   : > { %1537 = vrcp.f32 %v1020_v40 }
 0x3dd   : > { %v1086_v41 = vpop.xlane.xlu1 %1085 }
 0x3de   : > { %1539 = vrcp.f32 %v1086_v41 }
 0x3e1   : > { %v1152_v42 = vpop.xlane.xlu1 %1151 }
 0x3e2   : > { %1541 = vrcp.f32 %v1152_v42  ;;  %v1089_v43 = vpop.xlane.xlu0 %1088  ;;  %v1536_v44 = vpop.eup %1535 }
 0x3e3   : > { %1543 = vrcp.f32 %v1089_v43  ;;  %v1027_v46 = vmul.f32 %v1536_v44, %v1520_v17 }
 0x3e4   : > { %v1538_v45 = vpop.eup %1537 }
 0x3e5   : > { %v1026_v47 = vmul.f32 %v1538_v45, %v1522_v18  ;;  %v1218_v48 = vpop.xlane.xlu1 %1217  ;;  %1029 = vst.msk [vmem:[%s1723_s29 + $0x8] sm:$0xff] %vm750_vm5, %v1027_v46 }
 0x3e6   : > { %1545 = vrcp.f32 %v1218_v48  ;;  %v1155_v49 = vpop.xlane.xlu0 %1154 }
 0x3e7   : > { %1028 = vst.msk [vmem:[%s1723_s29] sm:$0xff] %vm750_vm5, %v1026_v47  ;;  %1547 = vrcp.f32 %v1155_v49 }
 0x3e8   : > { %v1540_v50 = vpop.eup %1539 }
 0x3e9   : > { %v1092_v51 = vmul.f32 %v1540_v50, %v1524_v25 }
 0x3ea   : > { %v1221_v52 = vpop.xlane.xlu0 %1220 }
 0x3eb   : > { %1094 = vst.msk [vmem:[%s1723_s29 + $0x10] sm:$0xff] %vm750_vm5, %v1092_v51  ;;  %1549 = vrcp.f32 %v1221_v52 }
 0x3ec   : > { %v1542_v53 = vpop.eup %1541 }
 0x3ed   : > { %v1544_v54 = vpop.eup %1543  ;;  %v1158_v55 = vmul.f32 %v1542_v53, %v1526_v28 }
 0x3ee   : > { %v1093_v56 = vmul.f32 %v1544_v54, %v1528_v29 }
 0x3ef   : > { %1160 = vst.msk [vmem:[%s1723_s29 + $0x20] sm:$0xff] %vm750_vm5, %v1158_v55 }
 0x3f0   : > { %v1546_v57 = vpop.eup %1545  ;;  %1095 = vst.msk [vmem:[%s1723_s29 + $0x18] sm:$0xff] %vm750_vm5, %v1093_v56 }
 0x3f1   : > { %v1548_v58 = vpop.eup %1547  ;;  %v1224_v38 = vmul.f32 %v1546_v57, %v1530_v32 }
 0x3f2   : > { %v1159_v59 = vmul.f32 %v1548_v58, %v1532_v33 }
 0x3f3   : > { %1226 = vst.msk [vmem:[%s1723_s29 + $0x30] sm:$0xff] %vm750_vm5, %v1224_v38 }
 0x3f4   : > { %1161 = vst.msk [vmem:[%s1723_s29 + $0x28] sm:$0xff] %vm750_vm5, %v1159_v59 }
 0x3f5   : > { %v1550_v60 = vpop.eup %1549 }
 0x3f6   : > { %v1225_v61 = vmul.f32 %v1550_v60, %v1534_v36 }
 0x3f8   : > { %1227 = vst.msk [vmem:[%s1723_s29 + $0x38] sm:$0xff] %vm750_vm5, %v1225_v61 }
 0x3f9 PF: > { %s20_s25 = sadd.s32 1, %s1619_s25   ;;  %s2001_s20 = smov %s1599_s21 }
 0x3fa   : > { %p17_p4 = scmp.ge.s32.totalorder %s20_s25, 6   ;;  %s2002_s21 = smov %s1706_s6 }
 0x3fb   : > { %s2003_s22 = smov %s1611_s23  ;;  %s2004_s0 = smov %s1615_s24 }
 0x3fc   : > { %s2005_s23 = smov %s2008_s26  ;;  %s2006_s24 = smov %s2012_s27 }
 0x3fd   :  { %19 = sbr.rel (!%p17_p4) target bundleno = 19 (0x13), region = 116 }

</bundles_post_ra>
